<compile_context>
chip_gen: v6e
topology: v6e:2x2x1
jax: 0.10.0
libtpu: 0.0.40
codegen_flags: <defaults>
</compile_context>

<pallas_src>
import functools

import jax
import jax.numpy as jnp
from jax.experimental import pallas as pl
from jax.experimental.pallas import tpu as pltpu  # noqa: F401


# --------------------------------------------------------------------------- #
# Fused kernel: GRU layers + MLP head + softmax, everything VMEM-resident.
# --------------------------------------------------------------------------- #
def _fused_forward_kernel(*refs, seq_len, batch, in_dim, hidden, n_actions,
                          n_layers, n_head_hidden):
    it = iter(refs)
    x_ref = next(it)                       # [B, T, I]
    h0_ref = next(it)                      # [n_layers, B, H]
    gru = [tuple(next(it) for _ in range(10)) for _ in range(n_layers)]
    head_hidden = [(next(it), next(it)) for _ in range(n_head_hidden)]
    w_out_ref = next(it)                   # [H, A]
    b_out_ref = next(it)                   # [1, A]
    probs_ref = next(it)                   # [B, T, A]
    values_ref = next(it)                  # [B, T, A]
    hn_ref = next(it)                      # [n_layers, B, H]

    B, T, H, A = batch, seq_len, hidden, n_actions
    f32 = jnp.float32

    # Batch-major flattened rows (row = b*T + t); this reshape is layout-preserving.
    feat = x_ref[...].reshape(B * T, in_dim)

    for layer in range(n_layers):
        (w_ir, w_iz, w_in, w_hr, w_hz, w_hn, b_r, b_z, b_in, b_hn) = tuple(
            r[...] for r in gru[layer])

        # All timesteps' input projections: three dense, lane-aligned MXU matmuls.
        # r/z biases already hold b_ih + b_hh (folded host-side).
        gx_r = (jnp.dot(feat, w_ir, preferred_element_type=f32) + b_r).reshape(B, T, H)
        gx_z = (jnp.dot(feat, w_iz, preferred_element_type=f32) + b_z).reshape(B, T, H)
        gx_n = (jnp.dot(feat, w_in, preferred_element_type=f32) + b_in).reshape(B, T, H)

        h = h0_ref[layer]                                       # [B, H]
        ys = []
        # Statically unrolled recurrence (T is small; state lives in vregs).
        # TODO(synk): for large T switch to lax.fori_loop + VMEM scratch carry
        #             (static Python `for` does not bound vreg live ranges).
        for t in range(T):
            gh_r = jnp.dot(h, w_hr, preferred_element_type=f32)
            gh_z = jnp.dot(h, w_hz, preferred_element_type=f32)
            gh_n = jnp.dot(h, w_hn, preferred_element_type=f32) + b_hn
            r = jax.nn.sigmoid(gx_r[:, t, :] + gh_r)
            z = jax.nn.sigmoid(gx_z[:, t, :] + gh_z)
            n = jnp.tanh(gx_n[:, t, :] + r * gh_n)
            h = (1.0 - z) * n + z * h
            ys.append(h)
        hn_ref[layer] = h

        # Per-step states stay on-chip (no HBM writeback of the GRU output slab);
        # rows stay batch-major (row = b*T + t) for the next layer / the head.
        feat = jnp.stack(ys, axis=1).reshape(B * T, H)
        # TODO(synk): training-mode inter-layer dropout and bidirectional=True
        #             are not implemented; this is the eval-mode forward.

    # MLP head (row order is irrelevant for the matmuls).
    for (w_ref, b_ref) in head_hidden:
        feat = jnp.maximum(
            jnp.dot(feat, w_ref[...], preferred_element_type=f32) + b_ref[...], 0.0)
    v = jnp.dot(feat, w_out_ref[...], preferred_element_type=f32) + b_out_ref[...]

    # Softmax over actions; divide via EUP reciprocal (exact).
    m = jnp.max(v, axis=-1, keepdims=True)
    e = jnp.exp(v - m)
    p = e * pl.reciprocal(jnp.sum(e, axis=-1, keepdims=True), approx=False)

    values_ref[...] = v.reshape(B, T, A)       # batch-major rows -> [B, T, A] is natural
    probs_ref[...] = p.reshape(B, T, A)


# --------------------------------------------------------------------------- #
# One-time weight preparation (kept in the param pytree; no per-call transposes)
# --------------------------------------------------------------------------- #
def prepare_params(params):
    hidden = params["gru"][0]["w_hh"].shape[1]
    H = hidden
    gru_flat = []
    for lp in params["gru"]:
        w_ih, w_hh, b_ih, b_hh = lp["w_ih"], lp["w_hh"], lp["b_ih"], lp["b_hh"]
        gru_flat += [
            w_ih[0:H].T, w_ih[H:2 * H].T, w_ih[2 * H:3 * H].T,      # [in, H] per gate
            w_hh[0:H].T, w_hh[H:2 * H].T, w_hh[2 * H:3 * H].T,      # [H, H] per gate
            (b_ih[0:H] + b_hh[0:H]).reshape(1, H),                  # folded r bias
            (b_ih[H:2 * H] + b_hh[H:2 * H]).reshape(1, H),          # folded z bias
            b_ih[2 * H:3 * H].reshape(1, H),                        # b_in
            b_hh[2 * H:3 * H].reshape(1, H),                        # b_hn (stays inside tanh term)
        ]
    head_flat = []
    for (w, b) in params["head"]:
        head_flat += [w.T, b.reshape(1, -1)]
    return dict(
        gru_flat=gru_flat,
        head_flat=head_flat,
        hidden=hidden,
        n_layers=len(params["gru"]),
        n_head_hidden=len(params["head"]) - 1,
        n_actions=params["head"][-1][0].shape[0],
    )


def _zero_map(ndim):
    return lambda: (0,) * ndim


def act_gru_forward(x, prepped, h0=None):
    """x: [B, T, input_size] (batch_first).  Returns (probs, values, hn)."""
    B, T, in_dim = x.shape
    H = prepped["hidden"]
    n_layers = prepped["n_layers"]
    n_head_hidden = prepped["n_head_hidden"]
    A = prepped["n_actions"]
    if h0 is None:
        h0 = jnp.zeros((n_layers, B, H), dtype=jnp.float32)

    inputs = [x, h0] + list(prepped["gru_flat"]) + list(prepped["head_flat"])
    in_specs = [pl.BlockSpec(a.shape, _zero_map(a.ndim)) for a in inputs]
    out_shape = (
        jax.ShapeDtypeStruct((B, T, A), jnp.float32),            # probs
        jax.ShapeDtypeStruct((B, T, A), jnp.float32),            # values
        jax.ShapeDtypeStruct((n_layers, B, H), jnp.float32),     # hn
    )
    out_specs = tuple(pl.BlockSpec(s.shape, _zero_map(len(s.shape))) for s in out_shape)

    kernel = functools.partial(
        _fused_forward_kernel, seq_len=T, batch=B, in_dim=in_dim, hidden=H,
        n_actions=A, n_layers=n_layers, n_head_hidden=n_head_hidden)

    # Single no-grid call: the whole working set is far below VMEM on v5e/v6e/v7x.
    # TODO(synk): for long sequences, tile the time axis with a grid (h carried in
    #             VMEM scratch) and budget for v7x's 64 MiB VMEM; for large batch,
    #             add a "parallel" batch grid axis so v7x's second core is used.
    probs, values, hn = pl.pallas_call(
        kernel,
        out_shape=out_shape,
        in_specs=in_specs,
        out_specs=out_specs,
    )(*inputs)
    return probs, values, hn


# --------------------------------------------------------------------------- #
# Parameter init (PyTorch weight conventions) and pure-JAX reference
# --------------------------------------------------------------------------- #
def init_params(key, dim_state, n_actions, hidden_size, n_layers, n_lls):
    input_size = dim_state + n_actions + 1 + dim_state
    keys = iter(jax.random.split(key, 64))
    gru = []
    for layer in range(n_layers):
        in_sz = input_size if layer == 0 else hidden_size
        s = 1.0 / float(hidden_size) ** 0.5
        gru.append(dict(
            w_ih=jax.random.uniform(next(keys), (3 * hidden_size, in_sz), jnp.float32, -s, s),
            w_hh=jax.random.uniform(next(keys), (3 * hidden_size, hidden_size), jnp.float32, -s, s),
            b_ih=jax.random.uniform(next(keys), (3 * hidden_size,), jnp.float32, -s, s),
            b_hh=jax.random.uniform(next(keys), (3 * hidden_size,), jnp.float32, -s, s),
        ))
    head = []
    gruout = hidden_size
    for _ in range(n_lls - 1):
        s = 1.0 / float(gruout) ** 0.5
        head.append((jax.random.uniform(next(keys), (gruout, gruout), jnp.float32, -s, s),
                     jax.random.uniform(next(keys), (gruout,), jnp.float32, -s, s)))
    s = 1.0 / float(gruout) ** 0.5
    head.append((jax.random.uniform(next(keys), (n_actions, gruout), jnp.float32, -s, s),
                 jax.random.uniform(next(keys), (n_actions,), jnp.float32, -s, s)))
    return dict(gru=gru, head=head)


def _reference_forward(x, params, h0=None):
    x = x.astype(jnp.float32)
    B, T, _ = x.shape
    n_layers = len(params["gru"])
    hidden = params["gru"][0]["w_hh"].shape[1]
    if h0 is None:
        h0 = jnp.zeros((n_layers, B, hidden), jnp.float32)
    layer_in = x
    hns = []
    for layer in range(n_layers):
        lp = params["gru"][layer]
        h = h0[layer]
        ys = []
        for t in range(T):
            x_t = layer_in[:, t, :]
            gx = x_t @ lp["w_ih"].T + lp["b_ih"]
            gh = h @ lp["w_hh"].T + lp["b_hh"]
            r = jax.nn.sigmoid(gx[:, :hidden] + gh[:, :hidden])
            z = jax.nn.sigmoid(gx[:, hidden:2 * hidden] + gh[:, hidden:2 * hidden])
            n = jnp.tanh(gx[:, 2 * hidden:] + r * gh[:, 2 * hidden:])
            h = (1.0 - z) * n + z * h
            ys.append(h)
        layer_in = jnp.stack(ys, axis=1)
        hns.append(h)
    hn = jnp.stack(hns, axis=0)
    feat = layer_in
    for (w, b) in params["head"][:-1]:
        feat = jax.nn.relu(feat @ w.T + b)
    w_last, b_last = params["head"][-1]
    values = feat @ w_last.T + b_last
    probs = jax.nn.softmax(values, axis=-1)
    return probs, values, hn


# --------------------------------------------------------------------------- #
if __name__ == "__main__":
    key = jax.random.PRNGKey(0)
    dim_state, n_actions = 4, 4
    hidden_size, n_layers, n_lls = 32, 1, 2
    B, T = 2, 8
    input_size = dim_state + n_actions + 1 + dim_state  # 13

    kp, kx = jax.random.split(key)
    params = init_params(kp, dim_state, n_actions, hidden_size, n_layers, n_lls)
    x = jax.random.normal(kx, (B, T, input_size), dtype=jnp.float32)

    prepped = prepare_params(params)          # one-time weight prep (cache & reuse)
    probs, values, hn = act_gru_forward(x, prepped)          # h0=None -> zeros
    probs, values, hn = jax.block_until_ready((probs, values, hn))

    r_probs, r_values, r_hn = _reference_forward(x, params)

    assert probs.shape == (B, T, n_actions)
    assert values.shape == (B, T, n_actions)
    assert hn.shape == (n_layers, B, hidden_size)
    assert bool(jnp.all(jnp.isfinite(values))) and bool(jnp.all(jnp.isfinite(probs)))
    assert jnp.allclose(values, r_values, rtol=1e-4, atol=1e-4)
    assert jnp.allclose(probs, r_probs, rtol=1e-4, atol=1e-4)
    assert jnp.allclose(hn, r_hn, rtol=1e-4, atol=1e-4)
    assert jnp.allclose(jnp.sum(probs, axis=-1), 1.0, rtol=1e-5, atol=1e-5)

    print("KERNEL_OK")
</pallas_src>

<mosaic_0001>
module attributes {stable_mosaic.version = 11 : i64} {
  func.func @_fused_forward_kernel(%arg0: memref<2x8x13xf32, #tpu.memory_space<vmem>>, %arg1: memref<1x2x32xf32, #tpu.memory_space<vmem>>, %arg2: memref<13x32xf32, #tpu.memory_space<vmem>>, %arg3: memref<13x32xf32, #tpu.memory_space<vmem>>, %arg4: memref<13x32xf32, #tpu.memory_space<vmem>>, %arg5: memref<32x32xf32, #tpu.memory_space<vmem>>, %arg6: memref<32x32xf32, #tpu.memory_space<vmem>>, %arg7: memref<32x32xf32, #tpu.memory_space<vmem>>, %arg8: memref<1x32xf32, #tpu.memory_space<vmem>>, %arg9: memref<1x32xf32, #tpu.memory_space<vmem>>, %arg10: memref<1x32xf32, #tpu.memory_space<vmem>>, %arg11: memref<1x32xf32, #tpu.memory_space<vmem>>, %arg12: memref<32x32xf32, #tpu.memory_space<vmem>>, %arg13: memref<1x32xf32, #tpu.memory_space<vmem>>, %arg14: memref<32x4xf32, #tpu.memory_space<vmem>>, %arg15: memref<1x4xf32, #tpu.memory_space<vmem>>, %arg16: memref<2x8x4xf32, #tpu.memory_space<vmem>>, %arg17: memref<2x8x4xf32, #tpu.memory_space<vmem>>, %arg18: memref<1x2x32xf32, #tpu.memory_space<vmem>>) attributes {dimension_semantics = [], scalar_prefetch = 0 : i64, scratch_operands = 0 : i64, tpu.core_type = #tpu.core_type<tc>} {
    %c0 = arith.constant 0 : index
    %c0_0 = arith.constant 0 : index
    %c0_1 = arith.constant 0 : index
    %0 = vector.load %arg0[%c0, %c0_0, %c0_1] : memref<2x8x13xf32, #tpu.memory_space<vmem>>, vector<2x8x13xf32>
    %1 = vector.shape_cast %0 : vector<2x8x13xf32> to vector<16x13xf32>
    %c0_2 = arith.constant 0 : index
    %c0_3 = arith.constant 0 : index
    %2 = vector.load %arg2[%c0_2, %c0_3] : memref<13x32xf32, #tpu.memory_space<vmem>>, vector<13x32xf32>
    %c0_4 = arith.constant 0 : index
    %c0_5 = arith.constant 0 : index
    %3 = vector.load %arg3[%c0_4, %c0_5] : memref<13x32xf32, #tpu.memory_space<vmem>>, vector<13x32xf32>
    %c0_6 = arith.constant 0 : index
    %c0_7 = arith.constant 0 : index
    %4 = vector.load %arg4[%c0_6, %c0_7] : memref<13x32xf32, #tpu.memory_space<vmem>>, vector<13x32xf32>
    %c0_8 = arith.constant 0 : index
    %c0_9 = arith.constant 0 : index
    %5 = vector.load %arg5[%c0_8, %c0_9] : memref<32x32xf32, #tpu.memory_space<vmem>>, vector<32x32xf32>
    %c0_10 = arith.constant 0 : index
    %c0_11 = arith.constant 0 : index
    %6 = vector.load %arg6[%c0_10, %c0_11] : memref<32x32xf32, #tpu.memory_space<vmem>>, vector<32x32xf32>
    %c0_12 = arith.constant 0 : index
    %c0_13 = arith.constant 0 : index
    %7 = vector.load %arg7[%c0_12, %c0_13] : memref<32x32xf32, #tpu.memory_space<vmem>>, vector<32x32xf32>
    %c0_14 = arith.constant 0 : index
    %c0_15 = arith.constant 0 : index
    %8 = vector.load %arg8[%c0_14, %c0_15] : memref<1x32xf32, #tpu.memory_space<vmem>>, vector<1x32xf32>
    %c0_16 = arith.constant 0 : index
    %c0_17 = arith.constant 0 : index
    %9 = vector.load %arg9[%c0_16, %c0_17] : memref<1x32xf32, #tpu.memory_space<vmem>>, vector<1x32xf32>
    %c0_18 = arith.constant 0 : index
    %c0_19 = arith.constant 0 : index
    %10 = vector.load %arg10[%c0_18, %c0_19] : memref<1x32xf32, #tpu.memory_space<vmem>>, vector<1x32xf32>
    %c0_20 = arith.constant 0 : index
    %c0_21 = arith.constant 0 : index
    %11 = vector.load %arg11[%c0_20, %c0_21] : memref<1x32xf32, #tpu.memory_space<vmem>>, vector<1x32xf32>
    %cst = arith.constant dense<0.000000e+00> : vector<16x32xf32>
    %12 = tpu.matmul %1, %2, %cst {dimension_numbers = #tpu.dot_dimension_numbers<[1], [0], [0], [1], [0, 0, 1, 1], [], []>} : vector<16x13xf32>, vector<13x32xf32>, vector<16x32xf32> -> vector<16x32xf32>
    %13 = vector.broadcast %8 : vector<1x32xf32> to vector<16x32xf32>
    %14 = arith.addf %12, %13 : vector<16x32xf32>
    %15 = vector.shape_cast %14 : vector<16x32xf32> to vector<2x8x32xf32>
    %cst_22 = arith.constant dense<0.000000e+00> : vector<16x32xf32>
    %16 = tpu.matmul %1, %3, %cst_22 {dimension_numbers = #tpu.dot_dimension_numbers<[1], [0], [0], [1], [0, 0, 1, 1], [], []>} : vector<16x13xf32>, vector<13x32xf32>, vector<16x32xf32> -> vector<16x32xf32>
    %17 = vector.broadcast %9 : vector<1x32xf32> to vector<16x32xf32>
    %18 = arith.addf %16, %17 : vector<16x32xf32>
    %19 = vector.shape_cast %18 : vector<16x32xf32> to vector<2x8x32xf32>
    %cst_23 = arith.constant dense<0.000000e+00> : vector<16x32xf32>
    %20 = tpu.matmul %1, %4, %cst_23 {dimension_numbers = #tpu.dot_dimension_numbers<[1], [0], [0], [1], [0, 0, 1, 1], [], []>} : vector<16x13xf32>, vector<13x32xf32>, vector<16x32xf32> -> vector<16x32xf32>
    %21 = vector.broadcast %10 : vector<1x32xf32> to vector<16x32xf32>
    %22 = arith.addf %20, %21 : vector<16x32xf32>
    %23 = vector.shape_cast %22 : vector<16x32xf32> to vector<2x8x32xf32>
    %c0_24 = arith.constant 0 : index
    %c0_25 = arith.constant 0 : index
    %c0_26 = arith.constant 0 : index
    %24 = vector.load %arg1[%c0_24, %c0_25, %c0_26] : memref<1x2x32xf32, #tpu.memory_space<vmem>>, vector<1x2x32xf32>
    %25 = vector.shape_cast %24 : vector<1x2x32xf32> to vector<2x32xf32>
    %cst_27 = arith.constant dense<0.000000e+00> : vector<2x32xf32>
    %26 = tpu.matmul %25, %5, %cst_27 {dimension_numbers = #tpu.dot_dimension_numbers<[1], [0], [0], [1], [0, 0, 1, 1], [], []>} : vector<2x32xf32>, vector<32x32xf32>, vector<2x32xf32> -> vector<2x32xf32>
    %cst_28 = arith.constant dense<0.000000e+00> : vector<2x32xf32>
    %27 = tpu.matmul %25, %6, %cst_28 {dimension_numbers = #tpu.dot_dimension_numbers<[1], [0], [0], [1], [0, 0, 1, 1], [], []>} : vector<2x32xf32>, vector<32x32xf32>, vector<2x32xf32> -> vector<2x32xf32>
    %cst_29 = arith.constant dense<0.000000e+00> : vector<2x32xf32>
    %28 = tpu.matmul %25, %7, %cst_29 {dimension_numbers = #tpu.dot_dimension_numbers<[1], [0], [0], [1], [0, 0, 1, 1], [], []>} : vector<2x32xf32>, vector<32x32xf32>, vector<2x32xf32> -> vector<2x32xf32>
    %29 = vector.broadcast %11 : vector<1x32xf32> to vector<2x32xf32>
    %30 = arith.addf %28, %29 : vector<2x32xf32>
    %31 = vector.extract_strided_slice %15 {offsets = [0, 0, 0], sizes = [2, 1, 32], strides = [1, 1, 1]} : vector<2x8x32xf32> to vector<2x1x32xf32>
    %32 = vector.shape_cast %31 : vector<2x1x32xf32> to vector<2x32xf32>
    %33 = arith.addf %32, %26 : vector<2x32xf32>
    %34 = arith.negf %33 : vector<2x32xf32>
    %35 = math.exp %34 : vector<2x32xf32>
    %cst_30 = arith.constant 1.000000e+00 : f32
    %36 = vector.broadcast %cst_30 : f32 to vector<2x32xf32>
    %37 = arith.addf %36, %35 : vector<2x32xf32>
    %38 = arith.divf %36, %37 : vector<2x32xf32>
    %39 = vector.extract_strided_slice %19 {offsets = [0, 0, 0], sizes = [2, 1, 32], strides = [1, 1, 1]} : vector<2x8x32xf32> to vector<2x1x32xf32>
    %40 = vector.shape_cast %39 : vector<2x1x32xf32> to vector<2x32xf32>
    %41 = arith.addf %40, %27 : vector<2x32xf32>
    %42 = arith.negf %41 : vector<2x32xf32>
    %43 = math.exp %42 : vector<2x32xf32>
    %cst_31 = arith.constant 1.000000e+00 : f32
    %44 = vector.broadcast %cst_31 : f32 to vector<2x32xf32>
    %45 = arith.addf %44, %43 : vector<2x32xf32>
    %46 = arith.divf %44, %45 : vector<2x32xf32>
    %47 = vector.extract_strided_slice %23 {offsets = [0, 0, 0], sizes = [2, 1, 32], strides = [1, 1, 1]} : vector<2x8x32xf32> to vector<2x1x32xf32>
    %48 = vector.shape_cast %47 : vector<2x1x32xf32> to vector<2x32xf32>
    %49 = arith.mulf %38, %30 : vector<2x32xf32>
    %50 = arith.addf %48, %49 : vector<2x32xf32>
    %51 = math.tanh %50 : vector<2x32xf32>
    %cst_32 = arith.constant 1.000000e+00 : f32
    %52 = vector.broadcast %cst_32 : f32 to vector<2x32xf32>
    %53 = arith.subf %52, %46 : vector<2x32xf32>
    %54 = arith.mulf %53, %51 : vector<2x32xf32>
    %55 = arith.mulf %46, %25 : vector<2x32xf32>
    %56 = arith.addf %54, %55 : vector<2x32xf32>
    %cst_33 = arith.constant dense<0.000000e+00> : vector<2x32xf32>
    %57 = tpu.matmul %56, %5, %cst_33 {dimension_numbers = #tpu.dot_dimension_numbers<[1], [0], [0], [1], [0, 0, 1, 1], [], []>} : vector<2x32xf32>, vector<32x32xf32>, vector<2x32xf32> -> vector<2x32xf32>
    %cst_34 = arith.constant dense<0.000000e+00> : vector<2x32xf32>
    %58 = tpu.matmul %56, %6, %cst_34 {dimension_numbers = #tpu.dot_dimension_numbers<[1], [0], [0], [1], [0, 0, 1, 1], [], []>} : vector<2x32xf32>, vector<32x32xf32>, vector<2x32xf32> -> vector<2x32xf32>
    %cst_35 = arith.constant dense<0.000000e+00> : vector<2x32xf32>
    %59 = tpu.matmul %56, %7, %cst_35 {dimension_numbers = #tpu.dot_dimension_numbers<[1], [0], [0], [1], [0, 0, 1, 1], [], []>} : vector<2x32xf32>, vector<32x32xf32>, vector<2x32xf32> -> vector<2x32xf32>
    %60 = vector.broadcast %11 : vector<1x32xf32> to vector<2x32xf32>
    %61 = arith.addf %59, %60 : vector<2x32xf32>
    %62 = vector.extract_strided_slice %15 {offsets = [0, 1, 0], sizes = [2, 1, 32], strides = [1, 1, 1]} : vector<2x8x32xf32> to vector<2x1x32xf32>
    %63 = vector.shape_cast %62 : vector<2x1x32xf32> to vector<2x32xf32>
    %64 = arith.addf %63, %57 : vector<2x32xf32>
    %65 = arith.negf %64 : vector<2x32xf32>
    %66 = math.exp %65 : vector<2x32xf32>
    %cst_36 = arith.constant 1.000000e+00 : f32
    %67 = vector.broadcast %cst_36 : f32 to vector<2x32xf32>
    %68 = arith.addf %67, %66 : vector<2x32xf32>
    %69 = arith.divf %67, %68 : vector<2x32xf32>
    %70 = vector.extract_strided_slice %19 {offsets = [0, 1, 0], sizes = [2, 1, 32], strides = [1, 1, 1]} : vector<2x8x32xf32> to vector<2x1x32xf32>
    %71 = vector.shape_cast %70 : vector<2x1x32xf32> to vector<2x32xf32>
    %72 = arith.addf %71, %58 : vector<2x32xf32>
    %73 = arith.negf %72 : vector<2x32xf32>
    %74 = math.exp %73 : vector<2x32xf32>
    %cst_37 = arith.constant 1.000000e+00 : f32
    %75 = vector.broadcast %cst_37 : f32 to vector<2x32xf32>
    %76 = arith.addf %75, %74 : vector<2x32xf32>
    %77 = arith.divf %75, %76 : vector<2x32xf32>
    %78 = vector.extract_strided_slice %23 {offsets = [0, 1, 0], sizes = [2, 1, 32], strides = [1, 1, 1]} : vector<2x8x32xf32> to vector<2x1x32xf32>
    %79 = vector.shape_cast %78 : vector<2x1x32xf32> to vector<2x32xf32>
    %80 = arith.mulf %69, %61 : vector<2x32xf32>
    %81 = arith.addf %79, %80 : vector<2x32xf32>
    %82 = math.tanh %81 : vector<2x32xf32>
    %cst_38 = arith.constant 1.000000e+00 : f32
    %83 = vector.broadcast %cst_38 : f32 to vector<2x32xf32>
    %84 = arith.subf %83, %77 : vector<2x32xf32>
    %85 = arith.mulf %84, %82 : vector<2x32xf32>
    %86 = arith.mulf %77, %56 : vector<2x32xf32>
    %87 = arith.addf %85, %86 : vector<2x32xf32>
    %cst_39 = arith.constant dense<0.000000e+00> : vector<2x32xf32>
    %88 = tpu.matmul %87, %5, %cst_39 {dimension_numbers = #tpu.dot_dimension_numbers<[1], [0], [0], [1], [0, 0, 1, 1], [], []>} : vector<2x32xf32>, vector<32x32xf32>, vector<2x32xf32> -> vector<2x32xf32>
    %cst_40 = arith.constant dense<0.000000e+00> : vector<2x32xf32>
    %89 = tpu.matmul %87, %6, %cst_40 {dimension_numbers = #tpu.dot_dimension_numbers<[1], [0], [0], [1], [0, 0, 1, 1], [], []>} : vector<2x32xf32>, vector<32x32xf32>, vector<2x32xf32> -> vector<2x32xf32>
    %cst_41 = arith.constant dense<0.000000e+00> : vector<2x32xf32>
    %90 = tpu.matmul %87, %7, %cst_41 {dimension_numbers = #tpu.dot_dimension_numbers<[1], [0], [0], [1], [0, 0, 1, 1], [], []>} : vector<2x32xf32>, vector<32x32xf32>, vector<2x32xf32> -> vector<2x32xf32>
    %91 = vector.broadcast %11 : vector<1x32xf32> to vector<2x32xf32>
    %92 = arith.addf %90, %91 : vector<2x32xf32>
    %93 = vector.extract_strided_slice %15 {offsets = [0, 2, 0], sizes = [2, 1, 32], strides = [1, 1, 1]} : vector<2x8x32xf32> to vector<2x1x32xf32>
    %94 = vector.shape_cast %93 : vector<2x1x32xf32> to vector<2x32xf32>
    %95 = arith.addf %94, %88 : vector<2x32xf32>
    %96 = arith.negf %95 : vector<2x32xf32>
    %97 = math.exp %96 : vector<2x32xf32>
    %cst_42 = arith.constant 1.000000e+00 : f32
    %98 = vector.broadcast %cst_42 : f32 to vector<2x32xf32>
    %99 = arith.addf %98, %97 : vector<2x32xf32>
    %100 = arith.divf %98, %99 : vector<2x32xf32>
    %101 = vector.extract_strided_slice %19 {offsets = [0, 2, 0], sizes = [2, 1, 32], strides = [1, 1, 1]} : vector<2x8x32xf32> to vector<2x1x32xf32>
    %102 = vector.shape_cast %101 : vector<2x1x32xf32> to vector<2x32xf32>
    %103 = arith.addf %102, %89 : vector<2x32xf32>
    %104 = arith.negf %103 : vector<2x32xf32>
    %105 = math.exp %104 : vector<2x32xf32>
    %cst_43 = arith.constant 1.000000e+00 : f32
    %106 = vector.broadcast %cst_43 : f32 to vector<2x32xf32>
    %107 = arith.addf %106, %105 : vector<2x32xf32>
    %108 = arith.divf %106, %107 : vector<2x32xf32>
    %109 = vector.extract_strided_slice %23 {offsets = [0, 2, 0], sizes = [2, 1, 32], strides = [1, 1, 1]} : vector<2x8x32xf32> to vector<2x1x32xf32>
    %110 = vector.shape_cast %109 : vector<2x1x32xf32> to vector<2x32xf32>
    %111 = arith.mulf %100, %92 : vector<2x32xf32>
    %112 = arith.addf %110, %111 : vector<2x32xf32>
    %113 = math.tanh %112 : vector<2x32xf32>
    %cst_44 = arith.constant 1.000000e+00 : f32
    %114 = vector.broadcast %cst_44 : f32 to vector<2x32xf32>
    %115 = arith.subf %114, %108 : vector<2x32xf32>
    %116 = arith.mulf %115, %113 : vector<2x32xf32>
    %117 = arith.mulf %108, %87 : vector<2x32xf32>
    %118 = arith.addf %116, %117 : vector<2x32xf32>
    %cst_45 = arith.constant dense<0.000000e+00> : vector<2x32xf32>
    %119 = tpu.matmul %118, %5, %cst_45 {dimension_numbers = #tpu.dot_dimension_numbers<[1], [0], [0], [1], [0, 0, 1, 1], [], []>} : vector<2x32xf32>, vector<32x32xf32>, vector<2x32xf32> -> vector<2x32xf32>
    %cst_46 = arith.constant dense<0.000000e+00> : vector<2x32xf32>
    %120 = tpu.matmul %118, %6, %cst_46 {dimension_numbers = #tpu.dot_dimension_numbers<[1], [0], [0], [1], [0, 0, 1, 1], [], []>} : vector<2x32xf32>, vector<32x32xf32>, vector<2x32xf32> -> vector<2x32xf32>
    %cst_47 = arith.constant dense<0.000000e+00> : vector<2x32xf32>
    %121 = tpu.matmul %118, %7, %cst_47 {dimension_numbers = #tpu.dot_dimension_numbers<[1], [0], [0], [1], [0, 0, 1, 1], [], []>} : vector<2x32xf32>, vector<32x32xf32>, vector<2x32xf32> -> vector<2x32xf32>
    %122 = vector.broadcast %11 : vector<1x32xf32> to vector<2x32xf32>
    %123 = arith.addf %121, %122 : vector<2x32xf32>
    %124 = vector.extract_strided_slice %15 {offsets = [0, 3, 0], sizes = [2, 1, 32], strides = [1, 1, 1]} : vector<2x8x32xf32> to vector<2x1x32xf32>
    %125 = vector.shape_cast %124 : vector<2x1x32xf32> to vector<2x32xf32>
    %126 = arith.addf %125, %119 : vector<2x32xf32>
    %127 = arith.negf %126 : vector<2x32xf32>
    %128 = math.exp %127 : vector<2x32xf32>
    %cst_48 = arith.constant 1.000000e+00 : f32
    %129 = vector.broadcast %cst_48 : f32 to vector<2x32xf32>
    %130 = arith.addf %129, %128 : vector<2x32xf32>
    %131 = arith.divf %129, %130 : vector<2x32xf32>
    %132 = vector.extract_strided_slice %19 {offsets = [0, 3, 0], sizes = [2, 1, 32], strides = [1, 1, 1]} : vector<2x8x32xf32> to vector<2x1x32xf32>
    %133 = vector.shape_cast %132 : vector<2x1x32xf32> to vector<2x32xf32>
    %134 = arith.addf %133, %120 : vector<2x32xf32>
    %135 = arith.negf %134 : vector<2x32xf32>
    %136 = math.exp %135 : vector<2x32xf32>
    %cst_49 = arith.constant 1.000000e+00 : f32
    %137 = vector.broadcast %cst_49 : f32 to vector<2x32xf32>
    %138 = arith.addf %137, %136 : vector<2x32xf32>
    %139 = arith.divf %137, %138 : vector<2x32xf32>
    %140 = vector.extract_strided_slice %23 {offsets = [0, 3, 0], sizes = [2, 1, 32], strides = [1, 1, 1]} : vector<2x8x32xf32> to vector<2x1x32xf32>
    %141 = vector.shape_cast %140 : vector<2x1x32xf32> to vector<2x32xf32>
    %142 = arith.mulf %131, %123 : vector<2x32xf32>
    %143 = arith.addf %141, %142 : vector<2x32xf32>
    %144 = math.tanh %143 : vector<2x32xf32>
    %cst_50 = arith.constant 1.000000e+00 : f32
    %145 = vector.broadcast %cst_50 : f32 to vector<2x32xf32>
    %146 = arith.subf %145, %139 : vector<2x32xf32>
    %147 = arith.mulf %146, %144 : vector<2x32xf32>
    %148 = arith.mulf %139, %118 : vector<2x32xf32>
    %149 = arith.addf %147, %148 : vector<2x32xf32>
    %cst_51 = arith.constant dense<0.000000e+00> : vector<2x32xf32>
    %150 = tpu.matmul %149, %5, %cst_51 {dimension_numbers = #tpu.dot_dimension_numbers<[1], [0], [0], [1], [0, 0, 1, 1], [], []>} : vector<2x32xf32>, vector<32x32xf32>, vector<2x32xf32> -> vector<2x32xf32>
    %cst_52 = arith.constant dense<0.000000e+00> : vector<2x32xf32>
    %151 = tpu.matmul %149, %6, %cst_52 {dimension_numbers = #tpu.dot_dimension_numbers<[1], [0], [0], [1], [0, 0, 1, 1], [], []>} : vector<2x32xf32>, vector<32x32xf32>, vector<2x32xf32> -> vector<2x32xf32>
    %cst_53 = arith.constant dense<0.000000e+00> : vector<2x32xf32>
    %152 = tpu.matmul %149, %7, %cst_53 {dimension_numbers = #tpu.dot_dimension_numbers<[1], [0], [0], [1], [0, 0, 1, 1], [], []>} : vector<2x32xf32>, vector<32x32xf32>, vector<2x32xf32> -> vector<2x32xf32>
    %153 = vector.broadcast %11 : vector<1x32xf32> to vector<2x32xf32>
    %154 = arith.addf %152, %153 : vector<2x32xf32>
    %155 = vector.extract_strided_slice %15 {offsets = [0, 4, 0], sizes = [2, 1, 32], strides = [1, 1, 1]} : vector<2x8x32xf32> to vector<2x1x32xf32>
    %156 = vector.shape_cast %155 : vector<2x1x32xf32> to vector<2x32xf32>
    %157 = arith.addf %156, %150 : vector<2x32xf32>
    %158 = arith.negf %157 : vector<2x32xf32>
    %159 = math.exp %158 : vector<2x32xf32>
    %cst_54 = arith.constant 1.000000e+00 : f32
    %160 = vector.broadcast %cst_54 : f32 to vector<2x32xf32>
    %161 = arith.addf %160, %159 : vector<2x32xf32>
    %162 = arith.divf %160, %161 : vector<2x32xf32>
    %163 = vector.extract_strided_slice %19 {offsets = [0, 4, 0], sizes = [2, 1, 32], strides = [1, 1, 1]} : vector<2x8x32xf32> to vector<2x1x32xf32>
    %164 = vector.shape_cast %163 : vector<2x1x32xf32> to vector<2x32xf32>
    %165 = arith.addf %164, %151 : vector<2x32xf32>
    %166 = arith.negf %165 : vector<2x32xf32>
    %167 = math.exp %166 : vector<2x32xf32>
    %cst_55 = arith.constant 1.000000e+00 : f32
    %168 = vector.broadcast %cst_55 : f32 to vector<2x32xf32>
    %169 = arith.addf %168, %167 : vector<2x32xf32>
    %170 = arith.divf %168, %169 : vector<2x32xf32>
    %171 = vector.extract_strided_slice %23 {offsets = [0, 4, 0], sizes = [2, 1, 32], strides = [1, 1, 1]} : vector<2x8x32xf32> to vector<2x1x32xf32>
    %172 = vector.shape_cast %171 : vector<2x1x32xf32> to vector<2x32xf32>
    %173 = arith.mulf %162, %154 : vector<2x32xf32>
    %174 = arith.addf %172, %173 : vector<2x32xf32>
    %175 = math.tanh %174 : vector<2x32xf32>
    %cst_56 = arith.constant 1.000000e+00 : f32
    %176 = vector.broadcast %cst_56 : f32 to vector<2x32xf32>
    %177 = arith.subf %176, %170 : vector<2x32xf32>
    %178 = arith.mulf %177, %175 : vector<2x32xf32>
    %179 = arith.mulf %170, %149 : vector<2x32xf32>
    %180 = arith.addf %178, %179 : vector<2x32xf32>
    %cst_57 = arith.constant dense<0.000000e+00> : vector<2x32xf32>
    %181 = tpu.matmul %180, %5, %cst_57 {dimension_numbers = #tpu.dot_dimension_numbers<[1], [0], [0], [1], [0, 0, 1, 1], [], []>} : vector<2x32xf32>, vector<32x32xf32>, vector<2x32xf32> -> vector<2x32xf32>
    %cst_58 = arith.constant dense<0.000000e+00> : vector<2x32xf32>
    %182 = tpu.matmul %180, %6, %cst_58 {dimension_numbers = #tpu.dot_dimension_numbers<[1], [0], [0], [1], [0, 0, 1, 1], [], []>} : vector<2x32xf32>, vector<32x32xf32>, vector<2x32xf32> -> vector<2x32xf32>
    %cst_59 = arith.constant dense<0.000000e+00> : vector<2x32xf32>
    %183 = tpu.matmul %180, %7, %cst_59 {dimension_numbers = #tpu.dot_dimension_numbers<[1], [0], [0], [1], [0, 0, 1, 1], [], []>} : vector<2x32xf32>, vector<32x32xf32>, vector<2x32xf32> -> vector<2x32xf32>
    %184 = vector.broadcast %11 : vector<1x32xf32> to vector<2x32xf32>
    %185 = arith.addf %183, %184 : vector<2x32xf32>
    %186 = vector.extract_strided_slice %15 {offsets = [0, 5, 0], sizes = [2, 1, 32], strides = [1, 1, 1]} : vector<2x8x32xf32> to vector<2x1x32xf32>
    %187 = vector.shape_cast %186 : vector<2x1x32xf32> to vector<2x32xf32>
    %188 = arith.addf %187, %181 : vector<2x32xf32>
    %189 = arith.negf %188 : vector<2x32xf32>
    %190 = math.exp %189 : vector<2x32xf32>
    %cst_60 = arith.constant 1.000000e+00 : f32
    %191 = vector.broadcast %cst_60 : f32 to vector<2x32xf32>
    %192 = arith.addf %191, %190 : vector<2x32xf32>
    %193 = arith.divf %191, %192 : vector<2x32xf32>
    %194 = vector.extract_strided_slice %19 {offsets = [0, 5, 0], sizes = [2, 1, 32], strides = [1, 1, 1]} : vector<2x8x32xf32> to vector<2x1x32xf32>
    %195 = vector.shape_cast %194 : vector<2x1x32xf32> to vector<2x32xf32>
    %196 = arith.addf %195, %182 : vector<2x32xf32>
    %197 = arith.negf %196 : vector<2x32xf32>
    %198 = math.exp %197 : vector<2x32xf32>
    %cst_61 = arith.constant 1.000000e+00 : f32
    %199 = vector.broadcast %cst_61 : f32 to vector<2x32xf32>
    %200 = arith.addf %199, %198 : vector<2x32xf32>
    %201 = arith.divf %199, %200 : vector<2x32xf32>
    %202 = vector.extract_strided_slice %23 {offsets = [0, 5, 0], sizes = [2, 1, 32], strides = [1, 1, 1]} : vector<2x8x32xf32> to vector<2x1x32xf32>
    %203 = vector.shape_cast %202 : vector<2x1x32xf32> to vector<2x32xf32>
    %204 = arith.mulf %193, %185 : vector<2x32xf32>
    %205 = arith.addf %203, %204 : vector<2x32xf32>
    %206 = math.tanh %205 : vector<2x32xf32>
    %cst_62 = arith.constant 1.000000e+00 : f32
    %207 = vector.broadcast %cst_62 : f32 to vector<2x32xf32>
    %208 = arith.subf %207, %201 : vector<2x32xf32>
    %209 = arith.mulf %208, %206 : vector<2x32xf32>
    %210 = arith.mulf %201, %180 : vector<2x32xf32>
    %211 = arith.addf %209, %210 : vector<2x32xf32>
    %cst_63 = arith.constant dense<0.000000e+00> : vector<2x32xf32>
    %212 = tpu.matmul %211, %5, %cst_63 {dimension_numbers = #tpu.dot_dimension_numbers<[1], [0], [0], [1], [0, 0, 1, 1], [], []>} : vector<2x32xf32>, vector<32x32xf32>, vector<2x32xf32> -> vector<2x32xf32>
    %cst_64 = arith.constant dense<0.000000e+00> : vector<2x32xf32>
    %213 = tpu.matmul %211, %6, %cst_64 {dimension_numbers = #tpu.dot_dimension_numbers<[1], [0], [0], [1], [0, 0, 1, 1], [], []>} : vector<2x32xf32>, vector<32x32xf32>, vector<2x32xf32> -> vector<2x32xf32>
    %cst_65 = arith.constant dense<0.000000e+00> : vector<2x32xf32>
    %214 = tpu.matmul %211, %7, %cst_65 {dimension_numbers = #tpu.dot_dimension_numbers<[1], [0], [0], [1], [0, 0, 1, 1], [], []>} : vector<2x32xf32>, vector<32x32xf32>, vector<2x32xf32> -> vector<2x32xf32>
    %215 = vector.broadcast %11 : vector<1x32xf32> to vector<2x32xf32>
    %216 = arith.addf %214, %215 : vector<2x32xf32>
    %217 = vector.extract_strided_slice %15 {offsets = [0, 6, 0], sizes = [2, 1, 32], strides = [1, 1, 1]} : vector<2x8x32xf32> to vector<2x1x32xf32>
    %218 = vector.shape_cast %217 : vector<2x1x32xf32> to vector<2x32xf32>
    %219 = arith.addf %218, %212 : vector<2x32xf32>
    %220 = arith.negf %219 : vector<2x32xf32>
    %221 = math.exp %220 : vector<2x32xf32>
    %cst_66 = arith.constant 1.000000e+00 : f32
    %222 = vector.broadcast %cst_66 : f32 to vector<2x32xf32>
    %223 = arith.addf %222, %221 : vector<2x32xf32>
    %224 = arith.divf %222, %223 : vector<2x32xf32>
    %225 = vector.extract_strided_slice %19 {offsets = [0, 6, 0], sizes = [2, 1, 32], strides = [1, 1, 1]} : vector<2x8x32xf32> to vector<2x1x32xf32>
    %226 = vector.shape_cast %225 : vector<2x1x32xf32> to vector<2x32xf32>
    %227 = arith.addf %226, %213 : vector<2x32xf32>
    %228 = arith.negf %227 : vector<2x32xf32>
    %229 = math.exp %228 : vector<2x32xf32>
    %cst_67 = arith.constant 1.000000e+00 : f32
    %230 = vector.broadcast %cst_67 : f32 to vector<2x32xf32>
    %231 = arith.addf %230, %229 : vector<2x32xf32>
    %232 = arith.divf %230, %231 : vector<2x32xf32>
    %233 = vector.extract_strided_slice %23 {offsets = [0, 6, 0], sizes = [2, 1, 32], strides = [1, 1, 1]} : vector<2x8x32xf32> to vector<2x1x32xf32>
    %234 = vector.shape_cast %233 : vector<2x1x32xf32> to vector<2x32xf32>
    %235 = arith.mulf %224, %216 : vector<2x32xf32>
    %236 = arith.addf %234, %235 : vector<2x32xf32>
    %237 = math.tanh %236 : vector<2x32xf32>
    %cst_68 = arith.constant 1.000000e+00 : f32
    %238 = vector.broadcast %cst_68 : f32 to vector<2x32xf32>
    %239 = arith.subf %238, %232 : vector<2x32xf32>
    %240 = arith.mulf %239, %237 : vector<2x32xf32>
    %241 = arith.mulf %232, %211 : vector<2x32xf32>
    %242 = arith.addf %240, %241 : vector<2x32xf32>
    %cst_69 = arith.constant dense<0.000000e+00> : vector<2x32xf32>
    %243 = tpu.matmul %242, %5, %cst_69 {dimension_numbers = #tpu.dot_dimension_numbers<[1], [0], [0], [1], [0, 0, 1, 1], [], []>} : vector<2x32xf32>, vector<32x32xf32>, vector<2x32xf32> -> vector<2x32xf32>
    %cst_70 = arith.constant dense<0.000000e+00> : vector<2x32xf32>
    %244 = tpu.matmul %242, %6, %cst_70 {dimension_numbers = #tpu.dot_dimension_numbers<[1], [0], [0], [1], [0, 0, 1, 1], [], []>} : vector<2x32xf32>, vector<32x32xf32>, vector<2x32xf32> -> vector<2x32xf32>
    %cst_71 = arith.constant dense<0.000000e+00> : vector<2x32xf32>
    %245 = tpu.matmul %242, %7, %cst_71 {dimension_numbers = #tpu.dot_dimension_numbers<[1], [0], [0], [1], [0, 0, 1, 1], [], []>} : vector<2x32xf32>, vector<32x32xf32>, vector<2x32xf32> -> vector<2x32xf32>
    %246 = vector.broadcast %11 : vector<1x32xf32> to vector<2x32xf32>
    %247 = arith.addf %245, %246 : vector<2x32xf32>
    %248 = vector.extract_strided_slice %15 {offsets = [0, 7, 0], sizes = [2, 1, 32], strides = [1, 1, 1]} : vector<2x8x32xf32> to vector<2x1x32xf32>
    %249 = vector.shape_cast %248 : vector<2x1x32xf32> to vector<2x32xf32>
    %250 = arith.addf %249, %243 : vector<2x32xf32>
    %251 = arith.negf %250 : vector<2x32xf32>
    %252 = math.exp %251 : vector<2x32xf32>
    %cst_72 = arith.constant 1.000000e+00 : f32
    %253 = vector.broadcast %cst_72 : f32 to vector<2x32xf32>
    %254 = arith.addf %253, %252 : vector<2x32xf32>
    %255 = arith.divf %253, %254 : vector<2x32xf32>
    %256 = vector.extract_strided_slice %19 {offsets = [0, 7, 0], sizes = [2, 1, 32], strides = [1, 1, 1]} : vector<2x8x32xf32> to vector<2x1x32xf32>
    %257 = vector.shape_cast %256 : vector<2x1x32xf32> to vector<2x32xf32>
    %258 = arith.addf %257, %244 : vector<2x32xf32>
    %259 = arith.negf %258 : vector<2x32xf32>
    %260 = math.exp %259 : vector<2x32xf32>
    %cst_73 = arith.constant 1.000000e+00 : f32
    %261 = vector.broadcast %cst_73 : f32 to vector<2x32xf32>
    %262 = arith.addf %261, %260 : vector<2x32xf32>
    %263 = arith.divf %261, %262 : vector<2x32xf32>
    %264 = vector.extract_strided_slice %23 {offsets = [0, 7, 0], sizes = [2, 1, 32], strides = [1, 1, 1]} : vector<2x8x32xf32> to vector<2x1x32xf32>
    %265 = vector.shape_cast %264 : vector<2x1x32xf32> to vector<2x32xf32>
    %266 = arith.mulf %255, %247 : vector<2x32xf32>
    %267 = arith.addf %265, %266 : vector<2x32xf32>
    %268 = math.tanh %267 : vector<2x32xf32>
    %cst_74 = arith.constant 1.000000e+00 : f32
    %269 = vector.broadcast %cst_74 : f32 to vector<2x32xf32>
    %270 = arith.subf %269, %263 : vector<2x32xf32>
    %271 = arith.mulf %270, %268 : vector<2x32xf32>
    %272 = arith.mulf %263, %242 : vector<2x32xf32>
    %273 = arith.addf %271, %272 : vector<2x32xf32>
    %c0_75 = arith.constant 0 : index
    %c0_76 = arith.constant 0 : index
    %c0_77 = arith.constant 0 : index
    %274 = vector.load %arg18[%c0_75, %c0_76, %c0_77] : memref<1x2x32xf32, #tpu.memory_space<vmem>>, vector<1x2x32xf32>
    %275 = vector.shape_cast %274 : vector<1x2x32xf32> to vector<2x32xf32>
    %276 = vector.shape_cast %273 : vector<2x32xf32> to vector<1x2x32xf32>
    tpu.vector_store %arg18[%c0_75, %c0_76, %c0_77], %276 {strides = array<i32>} : memref<1x2x32xf32, #tpu.memory_space<vmem>>, vector<1x2x32xf32>,
    %277 = vector.shape_cast %56 : vector<2x32xf32> to vector<2x1x32xf32>
    %278 = vector.shape_cast %87 : vector<2x32xf32> to vector<2x1x32xf32>
    %279 = vector.shape_cast %118 : vector<2x32xf32> to vector<2x1x32xf32>
    %280 = vector.shape_cast %149 : vector<2x32xf32> to vector<2x1x32xf32>
    %281 = vector.shape_cast %180 : vector<2x32xf32> to vector<2x1x32xf32>
    %282 = vector.shape_cast %211 : vector<2x32xf32> to vector<2x1x32xf32>
    %283 = vector.shape_cast %242 : vector<2x32xf32> to vector<2x1x32xf32>
    %284 = vector.shape_cast %273 : vector<2x32xf32> to vector<2x1x32xf32>
    %285 = tpu.concatenate %277, %278, %279, %280, %281, %282, %283, %284 in 1 : vector<2x1x32xf32>, vector<2x1x32xf32>, vector<2x1x32xf32>, vector<2x1x32xf32>, vector<2x1x32xf32>, vector<2x1x32xf32>, vector<2x1x32xf32>, vector<2x1x32xf32> -> vector<2x8x32xf32>
    %286 = vector.shape_cast %285 : vector<2x8x32xf32> to vector<16x32xf32>
    %c0_78 = arith.constant 0 : index
    %c0_79 = arith.constant 0 : index
    %287 = vector.load %arg12[%c0_78, %c0_79] : memref<32x32xf32, #tpu.memory_space<vmem>>, vector<32x32xf32>
    %cst_80 = arith.constant dense<0.000000e+00> : vector<16x32xf32>
    %288 = tpu.matmul %286, %287, %cst_80 {dimension_numbers = #tpu.dot_dimension_numbers<[1], [0], [0], [1], [0, 0, 1, 1], [], []>} : vector<16x32xf32>, vector<32x32xf32>, vector<16x32xf32> -> vector<16x32xf32>
    %c0_81 = arith.constant 0 : index
    %c0_82 = arith.constant 0 : index
    %289 = vector.load %arg13[%c0_81, %c0_82] : memref<1x32xf32, #tpu.memory_space<vmem>>, vector<1x32xf32>
    %290 = vector.broadcast %289 : vector<1x32xf32> to vector<16x32xf32>
    %291 = arith.addf %288, %290 : vector<16x32xf32>
    %cst_83 = arith.constant 0.000000e+00 : f32
    %292 = vector.broadcast %cst_83 : f32 to vector<16x32xf32>
    %293 = arith.maximumf %291, %292 : vector<16x32xf32>
    %c0_84 = arith.constant 0 : index
    %c0_85 = arith.constant 0 : index
    %294 = vector.load %arg14[%c0_84, %c0_85] : memref<32x4xf32, #tpu.memory_space<vmem>>, vector<32x4xf32>
    %cst_86 = arith.constant dense<0.000000e+00> : vector<16x4xf32>
    %295 = tpu.matmul %293, %294, %cst_86 {dimension_numbers = #tpu.dot_dimension_numbers<[1], [0], [0], [1], [0, 0, 1, 1], [], []>} : vector<16x32xf32>, vector<32x4xf32>, vector<16x4xf32> -> vector<16x4xf32>
    %c0_87 = arith.constant 0 : index
    %c0_88 = arith.constant 0 : index
    %296 = vector.load %arg15[%c0_87, %c0_88] : memref<1x4xf32, #tpu.memory_space<vmem>>, vector<1x4xf32>
    %297 = vector.broadcast %296 : vector<1x4xf32> to vector<16x4xf32>
    %298 = arith.addf %295, %297 : vector<16x4xf32>
    %cst_89 = arith.constant dense<0xFF800000> : vector<16xf32>
    %299 = vector.multi_reduction <maximumf>, %298, %cst_89 [1] : vector<16x4xf32> to vector<16xf32>
    %300 = vector.shape_cast %299 : vector<16xf32> to vector<16x1xf32>
    %301 = vector.broadcast %300 : vector<16x1xf32> to vector<16x4xf32>
    %302 = arith.subf %298, %301 : vector<16x4xf32>
    %303 = math.exp %302 : vector<16x4xf32>
    %cst_90 = arith.constant dense<0.000000e+00> : vector<16xf32>
    %304 = vector.multi_reduction <add>, %303, %cst_90 [1] : vector<16x4xf32> to vector<16xf32>
    %305 = vector.shape_cast %304 : vector<16xf32> to vector<16x1xf32>
    %306 = tpu.reciprocal %305 : vector<16x1xf32> -> vector<16x1xf32>
    %307 = vector.broadcast %306 : vector<16x1xf32> to vector<16x4xf32>
    %308 = arith.mulf %303, %307 : vector<16x4xf32>
    %309 = vector.shape_cast %298 : vector<16x4xf32> to vector<2x8x4xf32>
    %c0_91 = arith.constant 0 : index
    %c0_92 = arith.constant 0 : index
    %c0_93 = arith.constant 0 : index
    %310 = vector.load %arg17[%c0_91, %c0_92, %c0_93] : memref<2x8x4xf32, #tpu.memory_space<vmem>>, vector<2x8x4xf32>
    tpu.vector_store %arg17[%c0_91, %c0_92, %c0_93], %309 {strides = array<i32>} : memref<2x8x4xf32, #tpu.memory_space<vmem>>, vector<2x8x4xf32>,
    %311 = vector.shape_cast %308 : vector<16x4xf32> to vector<2x8x4xf32>
    %c0_94 = arith.constant 0 : index
    %c0_95 = arith.constant 0 : index
    %c0_96 = arith.constant 0 : index
    %312 = vector.load %arg16[%c0_94, %c0_95, %c0_96] : memref<2x8x4xf32, #tpu.memory_space<vmem>>, vector<2x8x4xf32>
    tpu.vector_store %arg16[%c0_94, %c0_95, %c0_96], %311 {strides = array<i32>} : memref<2x8x4xf32, #tpu.memory_space<vmem>>, vector<2x8x4xf32>,
    return
  }
}

</mosaic_0001>

<bundles_post_ra>
// kernel: tpu_custom_call.1
= control target key start
LH: loop header
LB: loop body
LE: loop exit
PB: predicated region body
PF: predicated region fallthrough
CT: control target
= control target key end

     0   :  { %s4563_s0 = inlined_call_operand.hbm [shape: f32[2,8,13], index: 0, kind: input, shape index: {}]   ;;  %s4564_s1 = inlined_call_operand.vmem [shape: f32[1,2,32], index: 1, kind: input, shape index: {}]   ;;  %s4565_s2 = inlined_call_operand.hbm [shape: f32[13,32], index: 2, kind: input, shape index: {}]   ;;  %s4566_s3 = inlined_call_operand.hbm [shape: f32[13,32], index: 3, kind: input, shape index: {}]   ;;  %s4567_s4 = inlined_call_operand.hbm [shape: f32[13,32], index: 4, kind: input, shape index: {}]   ;;  %s4568_s5 = inlined_call_operand.vmem [shape: f32[32,32], index: 5, kind: input, shape index: {}]   ;;  %s4569_s6 = inlined_call_operand.hbm [shape: f32[32,32], index: 6, kind: input, shape index: {}]   ;;  %s4570_s7 = inlined_call_operand.hbm [shape: f32[32,32], index: 7, kind: input, shape index: {}]   ;;  %s4571_s8 = inlined_call_operand.vmem [shape: f32[1,32], index: 8, kind: input, shape index: {}]   ;;  %s4572_s9 = inlined_call_operand.vmem [shape: f32[1,32], index: 9, kind: input, shape index: {}]   ;;  %s4573_s10 = inlined_call_operand.vmem [shape: f32[1,32], index: 10, kind: input, shape index: {}]   ;;  %s4574_s11 = inlined_call_operand.vmem [shape: f32[1,32], index: 11, kind: input, shape index: {}]   ;;  %s4575_s12 = inlined_call_operand.hbm [shape: f32[32,32], index: 12, kind: input, shape index: {}]   ;;  %s4576_s13 = inlined_call_operand.vmem [shape: f32[1,32], index: 13, kind: input, shape index: {}]   ;;  %s4577_s14 = inlined_call_operand.vmem [shape: f32[32,4], index: 14, kind: input, shape index: {}]   ;;  %s4578_s15 = inlined_call_operand.vmem [shape: f32[1,4], index: 15, kind: input, shape index: {}]   ;;  %s4579_s16 = inlined_call_operand.vmem [shape: f32[2,8,4], index: 16, kind: output, shape index: {0}]   ;;  %s4580_s17 = inlined_call_operand.vmem [shape: f32[2,8,4], index: 17, kind: output, shape index: {1}]   ;;  %s4581_s18 = inlined_call_operand.hbm [shape: f32[1,2,32], index: 18, kind: output, shape index: {2}]  }
   0x1   :  { %4582 = sst [smem:[#allocation20_spill]] %s4563_s0 }
   0x2   :  { %4583 = sst [smem:[#allocation21_spill]] %s4564_s1 }
   0x3   :  { %4584 = sst [smem:[#allocation22_spill]] %s4565_s2 }
   0x4   :  { %24 = vsyncpa [#allocation3], 0 }
   0x5   :  { %25 = vsyncpa [#allocation6], 0 }
   0x6   :  { %26 = vsyncpa [#allocation9], 0 }
   0x7   :  { %27 = vsyncpa [#allocation12], 0 }
   0x8   :  { %28 = vsyncpa [#allocation4], 0  ;;  %s3812_s27 = smov [#allocation5]   ;;  %s3813_s29 = smov [#allocation8]  }
   0x9   :  { %s48_s28 = sshll.u32 %s3812_s27, 4  ;;  %s72_s30 = sshll.u32 %s3813_s29, 4  ;;  %s49_s28 = int_to_ptr.vmem [resolvable:$true] %s48_s28  ;;  %s73_s30 = int_to_ptr.vmem [resolvable:$true] %s72_s30 }
   0xa   :  { %s3650_s0 = scalar_lea.vmem %s49_s28, 256  ;;  %p3655_p1 = scmp.lt.s32.totalorder %s49_s28, %s49_s28 }
   0xb   :  { %p3651_p0 = scmp.ne.s32.totalorder %s49_s28, %s3650_s0  ;;  %p3656_p2 = scmp.lt.s32.totalorder %s3650_s0, %s3650_s0 }
   0xd   :  { %p3657_p3 = por %p3656_p2, %p3655_p1 }
   0xf   :  { %p3658_p4 = pnand %p3657_p3, %p3651_p0 }
  0x11   :  { %3661 = shalt.err (!%p3658_p4)
}
  0x12   :  { %s3814_s19 = smov 128   ;;  %s3815_s1 = smov 8  }
  0x13   :  { %s4585_s22 = sld [smem:[#allocation22_spill]]  ;;  %s3670_s2 = scalar_lea.vmem %s73_s30, 256 }
  0x14   :  { %p3671_p5 = scmp.ne.s32.totalorder %s73_s30, %s3670_s2  ;;  %p3675_p6 = scmp.lt.s32.totalorder %s73_s30, %s73_s30 }
  0x15   :  { %p3676_p7 = scmp.lt.s32.totalorder %s3670_s2, %s3670_s2 }
  0x17   :  { %p3677_p8 = por %p3676_p7, %p3675_p6 }
  0x19   :  { %54 = dma.hbm_to_vmem [thread:$0]  %s4585_s22, 256, %s49_s28, [#allocation6], %s3814_s19, %s3814_s19, %s3815_s1  }
  0x1a   :  { %p3678_p9 = pnand %p3677_p8, %p3671_p5 }
  0x1c   :  { %3681 = shalt.err (!%p3678_p9)
}
  0x1d   :  { %78 = dma.hbm_to_vmem [thread:$0]  %s4567_s4, 256, %s73_s30, [#allocation9], %s3814_s19, %s3814_s19, %s3815_s1  }
  0x1e   :  { %s3816_s25 = smov [#allocation11]   ;;  %s3817_s27 = smov [#allocation2]  }
  0x1f   :  { %s98_s26 = sshll.u32 %s3816_s25, 4  ;;  %s34_s29 = sshll.u32 %s3817_s27, 4  ;;  %s99_s26 = int_to_ptr.vmem [resolvable:$true] %s98_s26  ;;  %s35_s29 = int_to_ptr.vmem [resolvable:$true] %s34_s29 }
  0x20   :  { %s3690_s28 = scalar_lea.vmem %s99_s26, 512  ;;  %p3695_p11 = scmp.lt.s32.totalorder %s99_s26, %s99_s26 }
  0x21   :  { %p3691_p10 = scmp.ne.s32.totalorder %s99_s26, %s3690_s28  ;;  %p3696_p12 = scmp.lt.s32.totalorder %s3690_s28, %s3690_s28 }
  0x23   :  { %p3697_p13 = por %p3696_p12, %p3695_p11 }
  0x25   :  { %p3698_p0 = pnand %p3697_p13, %p3691_p10 }
  0x27   :  { %3701 = shalt.err (!%p3698_p0)
}
  0x28   :  { %104 = dma.hbm_to_vmem [thread:$0]  %s4570_s7, 512, %s99_s26, [#allocation12], %s3814_s19, %s3814_s19, %s3815_s1  }
  0x29   :  { %s3710_s4 = scalar_lea.vmem %s35_s29, 256  ;;  %p3715_p2 = scmp.lt.s32.totalorder %s35_s29, %s35_s29 }
  0x2a   :  { %p3711_p1 = scmp.ne.s32.totalorder %s35_s29, %s3710_s4  ;;  %p3716_p3 = scmp.lt.s32.totalorder %s3710_s4, %s3710_s4 }
  0x2c   :  { %p3717_p4 = por %p3716_p3, %p3715_p2 }
  0x2e   :  { %p3718_p5 = pnand %p3717_p4, %p3711_p1 }
  0x30   :  { %3721 = shalt.err (!%p3718_p5)
}
  0x31   :  { %s4586_s22 = sld [smem:[#allocation20_spill]]  ;;  %s3818_s2 = smov [#allocation7]  }
  0x32   :  { %s60_s23 = sshll.u32 %s3818_s2, 4  ;;  %s3819_s24 = smov [#allocation10]   ;;  %s61_s23 = int_to_ptr.vmem [resolvable:$true] %s60_s23 }
  0x33   :  { %s86_s25 = sshll.u32 %s3819_s24, 4  ;;  %s3730_s7 = scalar_lea.vmem %s61_s23, 256  ;;  %s87_s25 = int_to_ptr.vmem [resolvable:$true] %s86_s25 }
  0x34   :  { %p3731_p6 = scmp.ne.s32.totalorder %s61_s23, %s3730_s7  ;;  %p3735_p7 = scmp.lt.s32.totalorder %s61_s23, %s61_s23 }
  0x35   :  { %p3736_p8 = scmp.lt.s32.totalorder %s3730_s7, %s3730_s7 }
  0x37   :  { %40 = dma.hbm_to_vmem [thread:$0]  %s4586_s22, 256, %s35_s29, [#allocation3], %s3814_s19, %s3814_s19, %s3815_s1  }
  0x38   :  { %p3737_p9 = por %p3736_p8, %p3735_p7 }
  0x3a   :  { %p3738_p10 = pnand %p3737_p9, %p3731_p6 }
  0x3c   :  { %3741 = shalt.err (!%p3738_p10)
}
  0x3d   :  { %66 = dma.hbm_to_vmem [thread:$0]  %s4566_s3, 256, %s61_s23, [#allocation6], %s3814_s19, %s3814_s19, %s3815_s1  }
  0x3e   :  { %s3750_s29 = scalar_lea.vmem %s87_s25, 512  ;;  %p3755_p12 = scmp.lt.s32.totalorder %s87_s25, %s87_s25 }
  0x3f   :  { %p3751_p11 = scmp.ne.s32.totalorder %s87_s25, %s3750_s29  ;;  %p3756_p13 = scmp.lt.s32.totalorder %s3750_s29, %s3750_s29 }
  0x41   :  { %p3757_p0 = por %p3756_p13, %p3755_p12 }
  0x43   :  { %p3758_p1 = pnand %p3757_p0, %p3751_p11 }
  0x45   :  { %3761 = shalt.err (!%p3758_p1)
}
  0x46   :  { %92 = dma.hbm_to_vmem [thread:$0]  %s4569_s6, 512, %s87_s25, [#allocation9], %s3814_s19, %s3814_s19, %s3815_s1  }
  0x47   :  { %s3820_s20 = smov [#allocation13]  }
  0x48   :  { %s118_s4 = sshll.u32 %s3820_s20, 4  ;;  %s119_s4 = int_to_ptr.vmem [resolvable:$true] %s118_s4 }
  0x49   :  { %s3770_s30 = scalar_lea.vmem %s119_s4, 512  ;;  %p3775_p3 = scmp.lt.s32.totalorder %s119_s4, %s119_s4 }
  0x4a   :  { %p3771_p2 = scmp.ne.s32.totalorder %s119_s4, %s3770_s30  ;;  %p3776_p4 = scmp.lt.s32.totalorder %s3770_s30, %s3770_s30 }
  0x4c   :  { %p3777_p5 = por %p3776_p4, %p3775_p3 }
  0x4e   :  { %p3778_p6 = pnand %p3777_p5, %p3771_p2 }
  0x50   :  { %3781 = shalt.err (!%p3778_p6)
}
  0x51   :  { %124 = dma.hbm_to_vmem [thread:$0]  %s4575_s12, 512, %s119_s4, [#allocation12], %s3814_s19, %s3814_s19, %s3815_s1  }
  0x52   :  { %3802 = dma.done.wait [#allocation3], 256  }
  0x53   :  { %3803 = vsyncadd [#allocation3], 4294967040 }
  0x54   :  { %3804 = dma.done.wait [#allocation6], 512  }
  0x55   :  { %3805 = vsyncadd [#allocation6], 4294966784 }
  0x56   :  { %3806 = dma.done.wait [#allocation9], 768  }
  0x57   :  { %3807 = vsyncadd [#allocation9], 4294966528 }
  0x58   :  { %3808 = dma.done.wait [#allocation12], 1024  }
  0x59   :  { %3809 = vsyncadd [#allocation12], 4294966272  ;;  %vm189_vm0 = vcmask 1044480   ;;  %v155_v0 = vld [vmem:[#allocation5 + $0x8] sm:$0x1f]  ;;  %v154_v2 = vld [vmem:[#allocation5] sm:$0xff] }
  0x5a   :  { %v157_v1 = vld [vmem:[#allocation7 + $0x8] sm:$0x1f]  ;;  %3142 = vmatprep.subr.msk.mxu0 %vm189_vm0, %v155_v0  ;;  %v156_v3 = vld [vmem:[#allocation7] sm:$0xff]  ;;  %vm182_vm1 = vcmask 105472   ;;  %v159_v6 = vld [vmem:[#allocation8 + $0x8] sm:$0x1f] }
  0x5b   :  { %3149 = vmatprep.subr.msk.mxu1 %vm189_vm0, %v157_v1  ;;  %3143 = vmatpush3.msk.msra.mxu0 %vm189_vm0, %v155_v0  ;;  %v152_v4 = vld [vmem:[#allocation2] sm:$0xff]  ;;  %v153_v5 = vld [vmem:[#allocation2 + $0x8] sm:$0xff]  ;;  %v3970_v7 = vld [vmem:[%s4568_s5 + $0x18] sm:$0xff]  ;;  %v3821_v9 = vmov 0.0   ;;  %s4587_s26 = sld [smem:[#allocation21_spill]]  ;;  %vm437_vm2 = vcmask 261120  }
  0x5c   :  { %3150 = vmatpush3.msk.msra.mxu1 %vm189_vm0, %v157_v1  ;;  %3144 = vmatprep.subr.mxu0 %v154_v2  ;;  %v158_v8 = vld [vmem:[#allocation8] sm:$0xff]  ;;  %v3988_v11 = vld [vmem:[%s4568_s5 + $0x8] sm:$0xff]  ;;  %v3990_v12 = vld [vmem:[#allocation10 + $0x18] sm:$0xff]  ;;  %vm3822_vm3 = vmmov 0   ;;  %vm717_vm4 = vcmask 1041409   ;;  %vm2664_vm5 = vcmask 1040384  }
  0x5d   :  { %3151 = vmatprep.subr.mxu1 %v156_v3  ;;  %3145 = vmatpush3.msra.mxu0 %v154_v2  ;;  %v3979_v10 = vld [vmem:[%s4568_s5 + $0x10] sm:$0xff]  ;;  %v3999_v13 = vld [vmem:[%s4568_s5] sm:$0xff]  ;;  %v4015_v16 = vld [vmem:[#allocation10 + $0x8] sm:$0xff]  ;;  %vm2667_vm6 = vcmask 1041408   ;;  %vm2670_vm7 = vcmask 1042432   ;;  %vm2673_vm8 = vcmask 1043456  }
  0x5e   :  { %3152 = vmatpush3.msra.mxu1 %v156_v3  ;;  %3153 = vmatprep.mubr.msk.f32.mxu1 %vm182_vm1, %v152_v4  ;;  %v4003_v14 = vld [vmem:[#allocation10 + $0x10] sm:$0xff]  ;;  %v4020_v17 = vld [vmem:[#allocation11 + $0x18] sm:$0xff]  ;;  %v4023_v18 = vld [vmem:[#allocation10] sm:$0xff]  ;;  %vm2678_vm9 = vcmask 1045504   ;;  %vm2681_vm10 = vcmask 1046528   ;;  %vm2660_vm11 = vcmask 261127  }
  0x5f   :  { %3146 = vmatprep.mubr.msk.f32.mxu0 %vm182_vm1, %v152_v4  ;;  %3154 = vmatmul.mubr.msk.f32.vlgmr.msra.gmra.mxu1 %vm182_vm1, %v153_v5  ;;  %v4029_v19 = vld [vmem:[#allocation11 + $0x10] sm:$0xff]  ;;  %v4035_v20 = vld [vmem:[#allocation11 + $0x8] sm:$0xff]  ;;  %v4041_v21 = vld [vmem:[#allocation11] sm:$0xff]  ;;  %vm2662_vm12 = vcmask 253952   ;;  %vm2870_vm13 = vcmask 31744  }
  0x60   :  { %3156 = vmatprep.subr.msk.mxu0 %vm189_vm0, %v159_v6  ;;  %3163 = vmatprep.subr.mxu1 %v3821_v9  ;;  %v2923_v25 = vld [vmem:[%s4571_s8] ss:$0 sm:$0xff] }
  0x61   :  { %3147 = vmatmul.mubr.msk.f32.vlgmr.msra.gmra.mxu0 %vm182_vm1, %v153_v5  ;;  %3164 = vmatpush3.msra.mxu1 %v3970_v7  ;;  %v4008_v15 = vld [vmem:[%s4587_s26] sm:$0x3] }
  0x62   :  { %3157 = vmatpush3.msk.msra.mxu0 %vm189_vm0, %v159_v6  ;;  %3165 = vmatprep.subr.mxu1 %v3821_v9  ;;  %v2927_v35 = vld [vmem:[%s4572_s9] ss:$0 sm:$0xff] }
  0x63   :  { %3158 = vmatprep.subr.mxu0 %v158_v8  ;;  %3166 = vmatpush3.msra.mxu1 %v3979_v10  ;;  %v4093_v54 = vld [vmem:[%s4574_s11] ss:$0 sm:$0xff] }
  0x64   :  { %3159 = vmatpush3.msra.mxu0 %v158_v8  ;;  %3160 = vmatprep.mubr.msk.f32.mxu0 %vm182_vm1, %v152_v4  ;;  %v2931_v58 = vld [vmem:[%s4573_s10] ss:$0 sm:$0xff] }
  0x65   :  { %3167 = vmatprep.subr.mxu1 %v3821_v9  ;;  %3174 = vmatprep.subr.mxu0 %v3821_v9 }
  0x66   :  { %3161 = vmatmul.mubr.msk.f32.vlgmr.msra.gmra.mxu0 %vm182_vm1, %v153_v5  ;;  %3168 = vmatpush3.msra.mxu1 %v3988_v11 }
  0x67   :  { %3175 = vmatpush3.msra.mxu0 %v3990_v12  ;;  %3169 = vmatprep.subr.mxu1 %v3821_v9 }
  0x68   :  { %3176 = vmatprep.subr.mxu0 %v3821_v9  ;;  %3170 = vmatpush3.msra.mxu1 %v3999_v13 }
  0x69   :  { %3171 = vmatprep.mubr.msk.f32.mxu1 %vm3822_vm3, %v3821_v9  ;;  %3177 = vmatpush3.msra.mxu0 %v4003_v14 }
  0x6a   :  { %3172 = vmatmul.mubr.msk.f32.vlgmr.msra.gmra.mxu1 %vm437_vm2, %v4008_v15  ;;  %3178 = vmatprep.subr.mxu0 %v3821_v9 }
  0x6b   :  { %3182 = vmatprep.mubr.msk.f32.mxu0 %vm3822_vm3, %v3821_v9  ;;  %3179 = vmatpush3.msra.mxu0 %v4015_v16 }
  0x6c   :  { %3185 = vmatprep.subr.mxu1 %v3821_v9  ;;  %3180 = vmatprep.subr.mxu0 %v3821_v9 }
  0x6d   :  { %3186 = vmatpush3.msra.mxu1 %v4020_v17  ;;  %3181 = vmatpush3.msra.mxu0 %v4023_v18 }
  0x6e   :  { %3187 = vmatprep.subr.mxu1 %v3821_v9  ;;  %3183 = vmatmul.mubr.msk.f32.vlgmr.msra.gmra.mxu0 %vm437_vm2, %v4008_v15 }
  0x6f   :  { %3188 = vmatpush3.msra.mxu1 %v4029_v19  ;;  %3193 = vmatprep.mubr.msk.f32.mxu1 %vm3822_vm3, %v3821_v9 }
  0x70   :  { %3189 = vmatprep.subr.mxu1 %v3821_v9  ;;  %3196 = vmatprep.subr.mxu0 %v3821_v9 }
  0x71   :  { %3190 = vmatpush3.msra.mxu1 %v4035_v20  ;;  %3197 = vmatpush3.msra.mxu0 %v3970_v7 }
  0x72   :  { %3191 = vmatprep.subr.mxu1 %v3821_v9  ;;  %3198 = vmatprep.subr.mxu0 %v3821_v9 }
  0x73   :  { %3192 = vmatpush3.msra.mxu1 %v4041_v21  ;;  %3199 = vmatpush3.msra.mxu0 %v3979_v10 }
  0x74   :  { %3194 = vmatmul.mubr.msk.f32.vlgmr.msra.gmra.mxu1 %vm437_vm2, %v4008_v15  ;;  %3207 = vmatprep.subr.mxu1 %v3821_v9 }
  0x75   :  { %3208 = vmatpush3.msra.mxu1 %v3990_v12  ;;  %3200 = vmatprep.subr.mxu0 %v3821_v9 }
  0x76   :  { %3209 = vmatprep.subr.mxu1 %v3821_v9  ;;  %3201 = vmatpush3.msra.mxu0 %v3988_v11 }
  0x77   :  { %3210 = vmatpush3.msra.mxu1 %v4003_v14  ;;  %3202 = vmatprep.subr.mxu0 %v3821_v9 }
  0x78   :  { %3211 = vmatprep.subr.mxu1 %v3821_v9  ;;  %3203 = vmatpush3.msra.mxu0 %v3999_v13 }
  0x79   :  { %3212 = vmatpush3.msra.mxu1 %v4015_v16  ;;  %3204 = vmatprep.mubr.msk.f32.mxu0 %vm3822_vm3, %v3821_v9 }
  0x7a   :  { %3213 = vmatprep.subr.mxu1 %v3821_v9  ;;  %3215 = vmatprep.mubr.msk.f32.mxu1 %vm3822_vm3, %v3821_v9 }
  0x7b   :  { %3214 = vmatpush3.msra.mxu1 %v4023_v18  ;;  %3218 = vmatprep.subr.mxu0 %v3821_v9 }
  0x7c   :  { %3229 = vmatprep.subr.mxu1 %v3821_v9 }
 0x11f   :  { %v3155_v24 = vpop.f32.mrf.mxu1 }
 0x120   :  { %v4086_v42 = vadd.f32 %v3155_v24, %v2927_v35 }
 0x121   :  { %v3148_v22 = vpop.f32.mrf.mxu0  ;;  %v343_v28 = vpop.f32.mrf.mxu1 }
 0x122   :  { %v4077_v29 = vadd.f32 %v3148_v22, %v2923_v25  ;;  %v4084_v40 = vadd.f32 %v2927_v35, %v343_v28  ;;  %v707_v22 = vrot.slane %v4008_v15, 1 }
 0x123   :  { %v259_v23 = vpop.f32.mrf.mxu0 }
 0x124   :  { %v4075_v26 = vadd.f32 %v2923_v25, %v259_v23 }
 0x126   :  { %v3162_v27 = vpop.f32.mrf.mxu0 }
 0x127   :  { %v4101_v2 = vadd.f32 %v3162_v27, %v2931_v58 }
 0x128   :  { %v427_v33 = vpop.f32.mrf.mxu0 }
 0x129   :  { %v4099_v63 = vadd.f32 %v2931_v58, %v427_v33 }
 0x12a   :  { %v507_v30 = vpop.f32.mrf.mxu1 }
 0x12b   :  { %v658_v31 = vrot.slane %v507_v30, 1  ;;  %v661_v32 = vadd.f32 %v507_v30, %v4075_v26 }
 0x12c   :  { %v3173_v34 = vpop.f32.mrf.mxu1 }
 0x12d   :  { %v662_v36 = vadd.f32 %v658_v31, %v4077_v29  ;;  %v2939_v37 = vmul.f32 -1.442695, %v661_v32 }
 0x12e   :  { %v577_v39 = vpop.f32.mrf.mxu0 }
 0x12f   :  { %3461 = vpow2.f32 %v2939_v37  ;;  %v2940_v38 = vmul.f32 -1.442695, %v662_v36  ;;  %v676_v41 = vrot.slane %v577_v39, 1  ;;  %v679_v44 = vadd.f32 %v577_v39, %v4084_v40 }
 0x130   :  { %v3184_v43 = vpop.f32.mrf.mxu0 }
 0x131   :  { %3463 = vpow2.f32 %v2940_v38  ;;  %v680_v45 = vadd.f32 %v676_v41, %v4086_v42  ;;  %v2941_v47 = vmul.f32 -1.442695, %v679_v44 }
 0x133   :  { %v2942_v49 = vmul.f32 -1.442695, %v680_v45  ;;  %3465 = vpow2.f32 %v2941_v47 }
 0x134   :  { %v653_v46 = vpop.f32.mrf.mxu1 }
 0x135   :  { %3467 = vpow2.f32 %v2942_v49  ;;  %v654_v56 = vadd.f32 %v4093_v54, %v653_v46 }
 0x136   :  { %v3195_v48 = vpop.f32.mrf.mxu1 }
 0x137   :  { %v694_v61 = vrot.slane %v654_v56, 1 }
 0x13c   :  { %v3462_v50 = vpop.eup %3461 }
 0x13d   :  { %v669_v51 = vadd.f32 1.0, %v3462_v50 }
 0x13e   :  { %v3464_v52 = vpop.eup %3463 }
 0x13f   :  { %v670_v53 = vadd.f32 1.0, %v3464_v52  ;;  %3469 = vrcp.f32 %v669_v51 }
 0x140   :  { %v3466_v55 = vpop.eup %3465 }
 0x141   :  { %3471 = vrcp.f32 %v670_v53  ;;  %v687_v59 = vadd.f32 1.0, %v3466_v55 }
 0x142   :  { %v3468_v57 = vpop.eup %3467 }
 0x143   :  { %v688_v60 = vadd.f32 1.0, %v3468_v57  ;;  %3473 = vrcp.f32 %v687_v59 }
 0x145   :  { %3475 = vrcp.f32 %v688_v60 }
 0x14c   :  { %v3470_v62 = vpop.eup %3469 }
 0x14d   :  { %v697_v0 = vmul.f32 %v3470_v62, %v654_v56 }
 0x14e   :  { %v3472_v1 = vpop.eup %3471 }
 0x14f   :  { %v698_v3 = vmul.f32 %v3472_v1, %v694_v61  ;;  %v699_v4 = vadd.f32 %v697_v0, %v4099_v63 }
 0x150   :  { %v3474_v6 = vpop.eup %3473 }
 0x151   :  { %v700_v5 = vadd.f32 %v698_v3, %v4101_v2  ;;  %3477 = vtanh.f32 %v699_v4  ;;  %v703_v24 = vsub.f32 1.0, %v3474_v6  ;;  %v710_v32 = vmul.f32 %v3474_v6, %v4008_v15 }
 0x152   :  { %v3476_v8 = vpop.eup %3475 }
 0x153   :  { %3479 = vtanh.f32 %v700_v5  ;;  %v704_v25 = vsub.f32 1.0, %v3476_v8  ;;  %v711_v27 = vmul.f32 %v3476_v8, %v707_v22 }
 0x15e   :  { %v3478_v23 = vpop.eup %3477 }
 0x15f   :  { %v705_v30 = vmul.f32 %v3478_v23, %v703_v24 }
 0x160   :  { %v3480_v28 = vpop.eup %3479 }
 0x161   :  { %v706_v31 = vmul.f32 %v3480_v28, %v704_v25  ;;  %v4109_v34 = vadd.f32 %v710_v32, %v705_v30 }
 0x163   :  { %v4107_v33 = vadd.f32 %v711_v27, %v706_v31  ;;  %v981_v28 = vrot.slane %v4109_v34, 7 }
 0x165   :  { %v716_v35 = vrot.slane %v4107_v33, 7 }
 0x167   :  { %v718_v36 = vsel %vm717_vm4, %v716_v35, %v4109_v34 }
 0x168   :  { %3205 = vmatmul.mubr.msk.f32.vlgmr.msra.gmra.mxu0 %vm437_vm2, %v718_v36  ;;  %3216 = vmatmul.mubr.msk.f32.vlgmr.msra.gmra.mxu1 %vm437_vm2, %v718_v36 }
 0x169   :  { %3219 = vmatpush3.msra.mxu0 %v4020_v17  ;;  %3226 = vmatprep.mubr.msk.f32.mxu0 %vm3822_vm3, %v3821_v9 }
 0x16a   :  { %3220 = vmatprep.subr.mxu0 %v3821_v9  ;;  %3230 = vmatpush3.msra.mxu1 %v3970_v7 }
 0x16b   :  { %3221 = vmatpush3.msra.mxu0 %v4029_v19  ;;  %3231 = vmatprep.subr.mxu1 %v3821_v9 }
 0x16c   :  { %3222 = vmatprep.subr.mxu0 %v3821_v9  ;;  %3232 = vmatpush3.msra.mxu1 %v3979_v10 }
 0x16d   :  { %3223 = vmatpush3.msra.mxu0 %v4035_v20  ;;  %3233 = vmatprep.subr.mxu1 %v3821_v9 }
 0x16e   :  { %3224 = vmatprep.subr.mxu0 %v3821_v9  ;;  %3234 = vmatpush3.msra.mxu1 %v3988_v11 }
 0x16f   :  { %3225 = vmatpush3.msra.mxu0 %v4041_v21  ;;  %3235 = vmatprep.subr.mxu1 %v3821_v9 }
 0x170   :  { %3227 = vmatmul.mubr.msk.f32.vlgmr.msra.gmra.mxu0 %vm437_vm2, %v718_v36  ;;  %3240 = vmatprep.subr.mxu0 %v3821_v9 }
 0x171   :  { %3241 = vmatpush3.msra.mxu0 %v3990_v12  ;;  %3236 = vmatpush3.msra.mxu1 %v3999_v13 }
 0x172   :  { %3242 = vmatprep.subr.mxu0 %v3821_v9  ;;  %3237 = vmatprep.mubr.msk.f32.mxu1 %vm3822_vm3, %v3821_v9 }
 0x173   :  { %3243 = vmatpush3.msra.mxu0 %v4003_v14  ;;  %3248 = vmatprep.mubr.msk.f32.mxu0 %vm3822_vm3, %v3821_v9 }
 0x174   :  { %3244 = vmatprep.subr.mxu0 %v3821_v9  ;;  %3251 = vmatprep.subr.mxu1 %v3821_v9 }
 0x175   :  { %3245 = vmatpush3.msra.mxu0 %v4015_v16 }
 0x176   :  { %3246 = vmatprep.subr.mxu0 %v3821_v9 }
 0x177   :  { %3247 = vmatpush3.msra.mxu0 %v4023_v18 }
 0x178   :  { %3262 = vmatprep.subr.mxu0 %v3821_v9 }
 0x228   :  { %v787_v15 = vpop.f32.mrf.mxu0  ;;  %v857_v37 = vpop.f32.mrf.mxu1 }
 0x229   :  { %v932_v38 = vrot.slane %v787_v15, 7  ;;  %v936_v39 = vadd.f32 %v787_v15, %v4077_v29  ;;  %v950_v47 = vrot.slane %v857_v37, 7  ;;  %v954_v48 = vadd.f32 %v857_v37, %v4086_v42 }
 0x22a   :  { %v3206_v41 = vpop.f32.mrf.mxu0  ;;  %v3217_v43 = vpop.f32.mrf.mxu1 }
 0x22b   :  { %v935_v44 = vadd.f32 %v932_v38, %v4075_v26  ;;  %v2947_v45 = vmul.f32 -1.442695, %v936_v39  ;;  %v953_v50 = vadd.f32 %v950_v47, %v4084_v40  ;;  %v2949_v52 = vmul.f32 -1.442695, %v954_v48 }
 0x22d   :  { %v2946_v46 = vmul.f32 -1.442695, %v935_v44  ;;  %3481 = vpow2.f32 %v2947_v45  ;;  %v2948_v53 = vmul.f32 -1.442695, %v953_v50 }
 0x22f   :  { %3483 = vpow2.f32 %v2946_v46 }
 0x230   :  { %v927_v49 = vpop.f32.mrf.mxu0  ;;  %3485 = vpow2.f32 %v2949_v52 }
 0x231   :  { %3487 = vpow2.f32 %v2948_v53  ;;  %v928_v61 = vadd.f32 %v4093_v54, %v927_v49 }
 0x232   :  { %v3228_v51 = vpop.f32.mrf.mxu0 }
 0x233   :  { %v968_v3 = vrot.slane %v928_v61, 7 }
 0x23a   :  { %v3482_v55 = vpop.eup %3481 }
 0x23b   :  { %v944_v56 = vadd.f32 1.0, %v3482_v55 }
 0x23c   :  { %v3484_v57 = vpop.eup %3483 }
 0x23d   :  { %v943_v58 = vadd.f32 1.0, %v3484_v57  ;;  %3489 = vrcp.f32 %v944_v56  ;;  %v3486_v59 = vpop.eup %3485 }
 0x23e   :  { %v3488_v60 = vpop.eup %3487  ;;  %v962_v62 = vadd.f32 1.0, %v3486_v59 }
 0x23f   :  { %3491 = vrcp.f32 %v943_v58  ;;  %v961_v0 = vadd.f32 1.0, %v3488_v60 }
 0x240   :  { %3493 = vrcp.f32 %v962_v62 }
 0x241   :  { %3495 = vrcp.f32 %v961_v0 }
 0x24a   :  { %v3490_v1 = vpop.eup %3489 }
 0x24b   :  { %v972_v4 = vmul.f32 %v3490_v1, %v928_v61 }
 0x24c   :  { %v3492_v5 = vpop.eup %3491 }
 0x24d   :  { %v971_v6 = vmul.f32 %v3492_v5, %v968_v3  ;;  %v974_v8 = vadd.f32 %v972_v4, %v4101_v2  ;;  %v3494_v23 = vpop.eup %3493 }
 0x24e   :  { %v3496_v24 = vpop.eup %3495  ;;  %v978_v31 = vsub.f32 1.0, %v3494_v23  ;;  %v985_v37 = vmul.f32 %v3494_v23, %v716_v35 }
 0x24f   :  { %v973_v22 = vadd.f32 %v971_v6, %v4099_v63  ;;  %3497 = vtanh.f32 %v974_v8  ;;  %v977_v30 = vsub.f32 1.0, %v3496_v24  ;;  %v984_v15 = vmul.f32 %v3496_v24, %v981_v28 }
 0x251   :  { %3499 = vtanh.f32 %v973_v22 }
 0x25c   :  { %v3498_v25 = vpop.eup %3497 }
 0x25d   :  { %v980_v36 = vmul.f32 %v3498_v25, %v978_v31 }
 0x25e   :  { %v3500_v27 = vpop.eup %3499 }
 0x25f   :  { %v979_v32 = vmul.f32 %v3500_v27, %v977_v30  ;;  %v4161_v39 = vadd.f32 %v985_v37, %v980_v36 }
 0x261   :  { %v4159_v38 = vadd.f32 %v984_v15, %v979_v32 }
 0x263   :  { %v990_v41 = vrot.slane %v4159_v38, 1 }
 0x265   :  { %v991_v43 = vsel %vm717_vm4, %v4161_v39, %v990_v41  ;;  %v1257_v41 = vrot.slane %v4159_v38, 7 }
 0x266   :  { %3238 = vmatmul.mubr.msk.f32.vlgmr.msra.gmra.mxu1 %vm437_vm2, %v991_v43  ;;  %3249 = vmatmul.mubr.msk.f32.vlgmr.msra.gmra.mxu0 %vm437_vm2, %v991_v43 }
 0x267   :  { %3252 = vmatpush3.msra.mxu1 %v4020_v17  ;;  %3259 = vmatprep.mubr.msk.f32.mxu1 %vm3822_vm3, %v3821_v9 }
 0x268   :  { %3253 = vmatprep.subr.mxu1 %v3821_v9  ;;  %3263 = vmatpush3.msra.mxu0 %v3970_v7 }
 0x269   :  { %3254 = vmatpush3.msra.mxu1 %v4029_v19  ;;  %3264 = vmatprep.subr.mxu0 %v3821_v9 }
 0x26a   :  { %3255 = vmatprep.subr.mxu1 %v3821_v9  ;;  %3265 = vmatpush3.msra.mxu0 %v3979_v10 }
 0x26b   :  { %3256 = vmatpush3.msra.mxu1 %v4035_v20  ;;  %3266 = vmatprep.subr.mxu0 %v3821_v9 }
 0x26c   :  { %3257 = vmatprep.subr.mxu1 %v3821_v9  ;;  %3267 = vmatpush3.msra.mxu0 %v3988_v11 }
 0x26d   :  { %3258 = vmatpush3.msra.mxu1 %v4041_v21  ;;  %3268 = vmatprep.subr.mxu0 %v3821_v9 }
 0x26e   :  { %3260 = vmatmul.mubr.msk.f32.vlgmr.msra.gmra.mxu1 %vm437_vm2, %v991_v43  ;;  %3273 = vmatprep.subr.mxu1 %v3821_v9 }
 0x26f   :  { %3274 = vmatpush3.msra.mxu1 %v3990_v12  ;;  %3269 = vmatpush3.msra.mxu0 %v3999_v13 }
 0x270   :  { %3275 = vmatprep.subr.mxu1 %v3821_v9  ;;  %3270 = vmatprep.mubr.msk.f32.mxu0 %vm3822_vm3, %v3821_v9 }
 0x271   :  { %3276 = vmatpush3.msra.mxu1 %v4003_v14  ;;  %3281 = vmatprep.mubr.msk.f32.mxu1 %vm3822_vm3, %v3821_v9 }
 0x272   :  { %3277 = vmatprep.subr.mxu1 %v3821_v9  ;;  %3284 = vmatprep.subr.mxu0 %v3821_v9 }
 0x273   :  { %3278 = vmatpush3.msra.mxu1 %v4015_v16 }
 0x274   :  { %3279 = vmatprep.subr.mxu1 %v3821_v9 }
 0x275   :  { %3280 = vmatpush3.msra.mxu1 %v4023_v18 }
 0x276   :  { %3295 = vmatprep.subr.mxu1 %v3821_v9 }
 0x326   :  { %v1060_v35 = vpop.f32.mrf.mxu1  ;;  %v1130_v44 = vpop.f32.mrf.mxu0 }
 0x327   :  { %v1205_v45 = vrot.slane %v1060_v35, 6  ;;  %v1206_v46 = vrot.slane %v1060_v35, 7  ;;  %v1224_v53 = vrot.slane %v1130_v44, 6  ;;  %v1225_v55 = vrot.slane %v1130_v44, 7 }
 0x328   :  { %v3239_v47 = vpop.f32.mrf.mxu1  ;;  %v3250_v48 = vpop.f32.mrf.mxu0  ;;  %v1258_v35 = vrot.slane %v4161_v39, 7 }
 0x329   :  { %v1209_v49 = vadd.f32 %v1205_v45, %v4075_v26  ;;  %v1210_v50 = vadd.f32 %v1206_v46, %v4077_v29  ;;  %v1228_v57 = vadd.f32 %v1224_v53, %v4084_v40  ;;  %v1229_v58 = vadd.f32 %v1225_v55, %v4086_v42 }
 0x32a   :  { %v2666_v53 = vsel %vm2664_vm5, %v4107_v33, %v4161_v39 }
 0x32b   :  { %v2953_v51 = vmul.f32 -1.442695, %v1209_v49  ;;  %v2954_v52 = vmul.f32 -1.442695, %v1210_v50  ;;  %v2955_v60 = vmul.f32 -1.442695, %v1228_v57 }
 0x32c   :  { %v2956_v61 = vmul.f32 -1.442695, %v1229_v58 }
 0x32d   :  { %3501 = vpow2.f32 %v2953_v51 }
 0x32e   :  { %3503 = vpow2.f32 %v2954_v52  ;;  %v1200_v56 = vpop.f32.mrf.mxu1  ;;  %v2665_v52 = vsel %vm2664_vm5, %v4109_v34, %v4159_v38 }
 0x32f   :  { %3505 = vpow2.f32 %v2955_v60  ;;  %v1201_v6 = vadd.f32 %v4093_v54, %v1200_v56 }
 0x330   :  { %v3261_v59 = vpop.f32.mrf.mxu1  ;;  %3507 = vpow2.f32 %v2956_v61 }
 0x331   :  { %v1243_v23 = vrot.slane %v1201_v6, 6  ;;  %v1244_v25 = vrot.slane %v1201_v6, 7 }
 0x33a   :  { %v3502_v62 = vpop.eup %3501 }
 0x33b   :  { %v3504_v0 = vpop.eup %3503  ;;  %v1217_v1 = vadd.f32 1.0, %v3502_v62 }
 0x33c   :  { %v1218_v3 = vadd.f32 1.0, %v3504_v0  ;;  %v3506_v4 = vpop.eup %3505 }
 0x33d   :  { %3509 = vrcp.f32 %v1217_v1  ;;  %v3508_v5 = vpop.eup %3507  ;;  %v1236_v8 = vadd.f32 1.0, %v3506_v4 }
 0x33e   :  { %3511 = vrcp.f32 %v1218_v3  ;;  %v1237_v22 = vadd.f32 1.0, %v3508_v5 }
 0x33f   :  { %3513 = vrcp.f32 %v1236_v8 }
 0x340   :  { %3515 = vrcp.f32 %v1237_v22 }
 0x34a   :  { %v3510_v24 = vpop.eup %3509 }
 0x34b   :  { %v3512_v28 = vpop.eup %3511  ;;  %v1247_v30 = vmul.f32 %v3510_v24, %v1243_v23 }
 0x34c   :  { %v1248_v31 = vmul.f32 %v3512_v28, %v1244_v25  ;;  %v3514_v36 = vpop.eup %3513 }
 0x34d   :  { %v1249_v27 = vadd.f32 %v1247_v30, %v4099_v63  ;;  %v3516_v15 = vpop.eup %3515  ;;  %v1253_v37 = vsub.f32 1.0, %v3514_v36  ;;  %v1261_v47 = vmul.f32 %v3514_v36, %v1257_v41 }
 0x34e   :  { %v1250_v32 = vadd.f32 %v1248_v31, %v4101_v2  ;;  %v1254_v44 = vsub.f32 1.0, %v3516_v15  ;;  %v1262_v49 = vmul.f32 %v3516_v15, %v1258_v35 }
 0x34f   :  { %3517 = vtanh.f32 %v1249_v27 }
 0x350   :  { %3519 = vtanh.f32 %v1250_v32 }
 0x35c   :  { %v3518_v43 = vpop.eup %3517 }
 0x35d   :  { %v3520_v45 = vpop.eup %3519  ;;  %v1255_v46 = vmul.f32 %v3518_v43, %v1253_v37 }
 0x35e   :  { %v1256_v48 = vmul.f32 %v3520_v45, %v1254_v44 }
 0x35f   :  { %v4208_v50 = vadd.f32 %v1261_v47, %v1255_v46 }
 0x360   :  { %v4210_v51 = vadd.f32 %v1262_v49, %v1256_v48 }
 0x361   :  { %v1267_v55 = vrot.slane %v4208_v50, 2  ;;  %v4218_v56 = vsel %vm2667_vm6, %v2665_v52, %v4208_v50 }
 0x362   :  { %v1268_v57 = vrot.slane %v4210_v51, 1  ;;  %v4222_v58 = vsel %vm2667_vm6, %v2666_v53, %v4210_v51 }
 0x364   :  { %v1269_v59 = vsel %vm717_vm4, %v1268_v57, %v1267_v55  ;;  %v1535_v57 = vrot.slane %v4208_v50, 7 }
 0x365   :  { %3271 = vmatmul.mubr.msk.f32.vlgmr.msra.gmra.mxu0 %vm437_vm2, %v1269_v59  ;;  %3282 = vmatmul.mubr.msk.f32.vlgmr.msra.gmra.mxu1 %vm437_vm2, %v1269_v59 }
 0x366   :  { %3285 = vmatpush3.msra.mxu0 %v4020_v17  ;;  %3292 = vmatprep.mubr.msk.f32.mxu0 %vm3822_vm3, %v3821_v9 }
 0x367   :  { %3286 = vmatprep.subr.mxu0 %v3821_v9  ;;  %3296 = vmatpush3.msra.mxu1 %v3970_v7 }
 0x368   :  { %3287 = vmatpush3.msra.mxu0 %v4029_v19  ;;  %3297 = vmatprep.subr.mxu1 %v3821_v9 }
 0x369   :  { %3288 = vmatprep.subr.mxu0 %v3821_v9  ;;  %3298 = vmatpush3.msra.mxu1 %v3979_v10 }
 0x36a   :  { %3289 = vmatpush3.msra.mxu0 %v4035_v20  ;;  %3299 = vmatprep.subr.mxu1 %v3821_v9 }
 0x36b   :  { %3290 = vmatprep.subr.mxu0 %v3821_v9  ;;  %3300 = vmatpush3.msra.mxu1 %v3988_v11 }
 0x36c   :  { %3291 = vmatpush3.msra.mxu0 %v4041_v21  ;;  %3301 = vmatprep.subr.mxu1 %v3821_v9 }
 0x36d   :  { %3293 = vmatmul.mubr.msk.f32.vlgmr.msra.gmra.mxu0 %vm437_vm2, %v1269_v59  ;;  %3306 = vmatprep.subr.mxu0 %v3821_v9 }
 0x36e   :  { %3307 = vmatpush3.msra.mxu0 %v3990_v12  ;;  %3302 = vmatpush3.msra.mxu1 %v3999_v13 }
 0x36f   :  { %3308 = vmatprep.subr.mxu0 %v3821_v9  ;;  %3303 = vmatprep.mubr.msk.f32.mxu1 %vm3822_vm3, %v3821_v9 }
 0x370   :  { %3309 = vmatpush3.msra.mxu0 %v4003_v14  ;;  %3314 = vmatprep.mubr.msk.f32.mxu0 %vm3822_vm3, %v3821_v9 }
 0x371   :  { %3310 = vmatprep.subr.mxu0 %v3821_v9  ;;  %3317 = vmatprep.subr.mxu1 %v3821_v9 }
 0x372   :  { %3311 = vmatpush3.msra.mxu0 %v4015_v16 }
 0x373   :  { %3312 = vmatprep.subr.mxu0 %v3821_v9 }
 0x374   :  { %3313 = vmatpush3.msra.mxu0 %v4023_v18 }
 0x375   :  { %3328 = vmatprep.subr.mxu0 %v3821_v9 }
 0x425   :  { %v1338_v33 = vpop.f32.mrf.mxu0  ;;  %v1408_v34 = vpop.f32.mrf.mxu1 }
 0x426   :  { %v1483_v38 = vrot.slane %v1338_v33, 5  ;;  %v1484_v39 = vrot.slane %v1338_v33, 6  ;;  %v1502_v4 = vrot.slane %v1408_v34, 5  ;;  %v1503_v5 = vrot.slane %v1408_v34, 6 }
 0x427   :  { %v3272_v60 = vpop.f32.mrf.mxu0  ;;  %v3283_v61 = vpop.f32.mrf.mxu1  ;;  %v1536_v34 = vrot.slane %v4210_v51, 7 }
 0x428   :  { %v1487_v62 = vadd.f32 %v1483_v38, %v4075_v26  ;;  %v1488_v0 = vadd.f32 %v1484_v39, %v4077_v29  ;;  %v1506_v8 = vadd.f32 %v1502_v4, %v4084_v40  ;;  %v1507_v22 = vadd.f32 %v1503_v5, %v4086_v42 }
 0x42a   :  { %v2960_v1 = vmul.f32 -1.442695, %v1487_v62  ;;  %v2961_v3 = vmul.f32 -1.442695, %v1488_v0  ;;  %v2962_v24 = vmul.f32 -1.442695, %v1506_v8 }
 0x42b   :  { %v2963_v25 = vmul.f32 -1.442695, %v1507_v22 }
 0x42c   :  { %3521 = vpow2.f32 %v2960_v1 }
 0x42d   :  { %3523 = vpow2.f32 %v2961_v3  ;;  %v1478_v6 = vpop.f32.mrf.mxu0 }
 0x42e   :  { %3525 = vpow2.f32 %v2962_v24  ;;  %v1479_v15 = vadd.f32 %v4093_v54, %v1478_v6 }
 0x42f   :  { %v3294_v23 = vpop.f32.mrf.mxu0  ;;  %3527 = vpow2.f32 %v2963_v25 }
 0x430   :  { %v1521_v43 = vrot.slane %v1479_v15, 5  ;;  %v1522_v44 = vrot.slane %v1479_v15, 6 }
 0x439   :  { %v3522_v28 = vpop.eup %3521 }
 0x43a   :  { %v3524_v30 = vpop.eup %3523  ;;  %v1495_v31 = vadd.f32 1.0, %v3522_v28 }
 0x43b   :  { %v1496_v27 = vadd.f32 1.0, %v3524_v30  ;;  %v3526_v32 = vpop.eup %3525 }
 0x43c   :  { %3529 = vrcp.f32 %v1495_v31  ;;  %v3528_v36 = vpop.eup %3527  ;;  %v1514_v37 = vadd.f32 1.0, %v3526_v32 }
 0x43d   :  { %3531 = vrcp.f32 %v1496_v27  ;;  %v1515_v41 = vadd.f32 1.0, %v3528_v36 }
 0x43e   :  { %3533 = vrcp.f32 %v1514_v37 }
 0x43f   :  { %3535 = vrcp.f32 %v1515_v41 }
 0x449   :  { %v3530_v35 = vpop.eup %3529 }
 0x44a   :  { %v3532_v45 = vpop.eup %3531  ;;  %v1525_v46 = vmul.f32 %v3530_v35, %v1521_v43 }
 0x44b   :  { %v1526_v47 = vmul.f32 %v3532_v45, %v1522_v44  ;;  %v3534_v52 = vpop.eup %3533 }
 0x44c   :  { %v1527_v48 = vadd.f32 %v1525_v46, %v4099_v63  ;;  %v3536_v53 = vpop.eup %3535  ;;  %v1531_v55 = vsub.f32 1.0, %v3534_v52  ;;  %v1539_v60 = vmul.f32 %v3534_v52, %v1535_v57 }
 0x44d   :  { %v1528_v49 = vadd.f32 %v1526_v47, %v4101_v2  ;;  %v1532_v33 = vsub.f32 1.0, %v3536_v53  ;;  %v1540_v62 = vmul.f32 %v3536_v53, %v1536_v34 }
 0x44e   :  { %3537 = vtanh.f32 %v1527_v48 }
 0x44f   :  { %3539 = vtanh.f32 %v1528_v49 }
 0x45b   :  { %v3538_v59 = vpop.eup %3537 }
 0x45c   :  { %v3540_v38 = vpop.eup %3539  ;;  %v1533_v39 = vmul.f32 %v3538_v59, %v1531_v55 }
 0x45d   :  { %v1534_v61 = vmul.f32 %v3540_v38, %v1532_v33 }
 0x45e   :  { %v4267_v0 = vadd.f32 %v1539_v60, %v1533_v39 }
 0x45f   :  { %v4269_v1 = vadd.f32 %v1540_v62, %v1534_v61 }
 0x460   :  { %v1545_v3 = vrot.slane %v4267_v0, 3  ;;  %v4274_v4 = vsel %vm2670_vm7, %v4218_v56, %v4267_v0  ;;  %v1813_v33 = vrot.slane %v4267_v0, 7 }
 0x461   :  { %v1546_v50 = vrot.slane %v4269_v1, 2  ;;  %v4279_v51 = vsel %vm2670_vm7, %v4222_v58, %v4269_v1  ;;  %v1814_v39 = vrot.slane %v4269_v1, 7 }
 0x463   :  { %v1547_v5 = vsel %vm717_vm4, %v1546_v50, %v1545_v3 }
 0x464   :  { %3304 = vmatmul.mubr.msk.f32.vlgmr.msra.gmra.mxu1 %vm437_vm2, %v1547_v5  ;;  %3315 = vmatmul.mubr.msk.f32.vlgmr.msra.gmra.mxu0 %vm437_vm2, %v1547_v5 }
 0x465   :  { %3318 = vmatpush3.msra.mxu1 %v4020_v17  ;;  %3325 = vmatprep.mubr.msk.f32.mxu1 %vm3822_vm3, %v3821_v9 }
 0x466   :  { %3319 = vmatprep.subr.mxu1 %v3821_v9  ;;  %3329 = vmatpush3.msra.mxu0 %v3970_v7 }
 0x467   :  { %3320 = vmatpush3.msra.mxu1 %v4029_v19  ;;  %3330 = vmatprep.subr.mxu0 %v3821_v9 }
 0x468   :  { %3321 = vmatprep.subr.mxu1 %v3821_v9  ;;  %3331 = vmatpush3.msra.mxu0 %v3979_v10 }
 0x469   :  { %3322 = vmatpush3.msra.mxu1 %v4035_v20  ;;  %3332 = vmatprep.subr.mxu0 %v3821_v9 }
 0x46a   :  { %3323 = vmatprep.subr.mxu1 %v3821_v9  ;;  %3333 = vmatpush3.msra.mxu0 %v3988_v11 }
 0x46b   :  { %3324 = vmatpush3.msra.mxu1 %v4041_v21  ;;  %3334 = vmatprep.subr.mxu0 %v3821_v9 }
 0x46c   :  { %3326 = vmatmul.mubr.msk.f32.vlgmr.msra.gmra.mxu1 %vm437_vm2, %v1547_v5  ;;  %3339 = vmatprep.subr.mxu1 %v3821_v9 }
 0x46d   :  { %3340 = vmatpush3.msra.mxu1 %v3990_v12  ;;  %3335 = vmatpush3.msra.mxu0 %v3999_v13 }
 0x46e   :  { %3341 = vmatprep.subr.mxu1 %v3821_v9  ;;  %3336 = vmatprep.mubr.msk.f32.mxu0 %vm3822_vm3, %v3821_v9 }
 0x46f   :  { %3342 = vmatpush3.msra.mxu1 %v4003_v14  ;;  %3347 = vmatprep.mubr.msk.f32.mxu1 %vm3822_vm3, %v3821_v9 }
 0x470   :  { %3343 = vmatprep.subr.mxu1 %v3821_v9  ;;  %3350 = vmatprep.subr.mxu0 %v3821_v9 }
 0x471   :  { %3344 = vmatpush3.msra.mxu1 %v4015_v16 }
 0x472   :  { %3345 = vmatprep.subr.mxu1 %v3821_v9 }
 0x473   :  { %3346 = vmatpush3.msra.mxu1 %v4023_v18 }
 0x474   :  { %3361 = vmatprep.subr.mxu1 %v3821_v9 }
 0x524   :  { %v1616_v7 = vpop.f32.mrf.mxu1  ;;  %v1686_v10 = vpop.f32.mrf.mxu0 }
 0x525   :  { %v1761_v11 = vrot.slane %v1616_v7, 4  ;;  %v1762_v12 = vrot.slane %v1616_v7, 5  ;;  %v1780_v22 = vrot.slane %v1686_v10, 4  ;;  %v1781_v16 = vrot.slane %v1686_v10, 5 }
 0x526   :  { %v3305_v13 = vpop.f32.mrf.mxu1  ;;  %v3316_v14 = vpop.f32.mrf.mxu0 }
 0x527   :  { %v1765_v56 = vadd.f32 %v1761_v11, %v4075_v26  ;;  %v1766_v58 = vadd.f32 %v1762_v12, %v4077_v29  ;;  %v1784_v18 = vadd.f32 %v1780_v22, %v4084_v40  ;;  %v1785_v24 = vadd.f32 %v1781_v16, %v4086_v42  ;;  %v4392_v13 = vld [vmem:[#allocation10 + $0x8] sm:$0xff]  ;;  %v4396_v14 = vld [vmem:[#allocation10] sm:$0xff] }
 0x529   :  { %v2967_v6 = vmul.f32 -1.442695, %v1765_v56  ;;  %v2968_v8 = vmul.f32 -1.442695, %v1766_v58  ;;  %v2969_v28 = vmul.f32 -1.442695, %v1784_v18 }
 0x52a   :  { %v2970_v30 = vmul.f32 -1.442695, %v1785_v24 }
 0x52b   :  { %3541 = vpow2.f32 %v2967_v6 }
 0x52c   :  { %3543 = vpow2.f32 %v2968_v8  ;;  %v1756_v23 = vpop.f32.mrf.mxu1 }
 0x52d   :  { %3545 = vpow2.f32 %v2969_v28  ;;  %v1757_v41 = vadd.f32 %v4093_v54, %v1756_v23 }
 0x52e   :  { %v3327_v25 = vpop.f32.mrf.mxu1  ;;  %3547 = vpow2.f32 %v2970_v30 }
 0x52f   :  { %v1799_v44 = vrot.slane %v1757_v41, 4  ;;  %v1800_v46 = vrot.slane %v1757_v41, 5 }
 0x538   :  { %v3542_v31 = vpop.eup %3541 }
 0x539   :  { %v3544_v27 = vpop.eup %3543  ;;  %v1773_v32 = vadd.f32 1.0, %v3542_v31 }
 0x53a   :  { %v1774_v36 = vadd.f32 1.0, %v3544_v27  ;;  %v3546_v15 = vpop.eup %3545 }
 0x53b   :  { %3549 = vrcp.f32 %v1773_v32  ;;  %v3548_v37 = vpop.eup %3547  ;;  %v1792_v43 = vadd.f32 1.0, %v3546_v15 }
 0x53c   :  { %3551 = vrcp.f32 %v1774_v36  ;;  %v1793_v35 = vadd.f32 1.0, %v3548_v37 }
 0x53d   :  { %3553 = vrcp.f32 %v1792_v43 }
 0x53e   :  { %3555 = vrcp.f32 %v1793_v35 }
 0x548   :  { %v3550_v45 = vpop.eup %3549 }
 0x549   :  { %v3552_v47 = vpop.eup %3551  ;;  %v1803_v48 = vmul.f32 %v3550_v45, %v1799_v44 }
 0x54a   :  { %v1804_v49 = vmul.f32 %v3552_v47, %v1800_v46  ;;  %v3554_v55 = vpop.eup %3553 }
 0x54b   :  { %v1805_v52 = vadd.f32 %v1803_v48, %v4099_v63  ;;  %v3556_v57 = vpop.eup %3555  ;;  %v1809_v59 = vsub.f32 1.0, %v3554_v55  ;;  %v1817_v62 = vmul.f32 %v3554_v55, %v1813_v33 }
 0x54c   :  { %v1806_v53 = vadd.f32 %v1804_v49, %v4101_v2  ;;  %v1810_v38 = vsub.f32 1.0, %v3556_v57  ;;  %v1818_v50 = vmul.f32 %v3556_v57, %v1814_v39 }
 0x54d   :  { %3557 = vtanh.f32 %v1805_v52 }
 0x54e   :  { %3559 = vtanh.f32 %v1806_v53 }
 0x55a   :  { %v3558_v34 = vpop.eup %3557 }
 0x55b   :  { %v3560_v60 = vpop.eup %3559  ;;  %v1811_v61 = vmul.f32 %v3558_v34, %v1809_v59 }
 0x55c   :  { %v1812_v3 = vmul.f32 %v3560_v60, %v1810_v38 }
 0x55d   :  { %v4324_v5 = vadd.f32 %v1817_v62, %v1811_v61 }
 0x55e   :  { %v4326_v7 = vadd.f32 %v1818_v50, %v1812_v3 }
 0x55f   :  { %v1823_v10 = vrot.slane %v4324_v5, 4  ;;  %v4331_v11 = vsel %vm2673_vm8, %v4274_v4, %v4324_v5  ;;  %v4348_v4 = vld [vmem:[%s4568_s5 + $0x18] sm:$0xff] }
 0x560   :  { %v1824_v0 = vrot.slane %v4326_v7, 3  ;;  %v4336_v1 = vsel %vm2673_vm8, %v4279_v51, %v4326_v7  ;;  %v4379_v51 = vld [vmem:[%s4568_s5] sm:$0xff]  ;;  %v2092_v50 = vrot.slane %v4326_v7, 7 }
 0x562   :  { %v1825_v12 = vsel %vm717_vm4, %v1824_v0, %v1823_v10 }
 0x563   :  { %3337 = vmatmul.mubr.msk.f32.vlgmr.msra.gmra.mxu0 %vm437_vm2, %v1825_v12  ;;  %3348 = vmatmul.mubr.msk.f32.vlgmr.msra.gmra.mxu1 %vm437_vm2, %v1825_v12 }
 0x564   :  { %3351 = vmatpush3.msra.mxu0 %v4020_v17  ;;  %3358 = vmatprep.mubr.msk.f32.mxu0 %vm3822_vm3, %v3821_v9  ;;  %v4357_v17 = vld [vmem:[%s4568_s5 + $0x10] sm:$0xff] }
 0x565   :  { %3352 = vmatprep.subr.mxu0 %v3821_v9  ;;  %3362 = vmatpush3.msra.mxu1 %v4348_v4 }
 0x566   :  { %3353 = vmatpush3.msra.mxu0 %v4029_v19  ;;  %3363 = vmatprep.subr.mxu1 %v3821_v9  ;;  %v4366_v19 = vld [vmem:[%s4568_s5 + $0x8] sm:$0xff] }
 0x567   :  { %3354 = vmatprep.subr.mxu0 %v3821_v9  ;;  %3364 = vmatpush3.msra.mxu1 %v4357_v17 }
 0x568   :  { %3355 = vmatpush3.msra.mxu0 %v4035_v20  ;;  %3365 = vmatprep.subr.mxu1 %v3821_v9  ;;  %v4373_v20 = vld [vmem:[#allocation10 + $0x18] sm:$0xff] }
 0x569   :  { %3356 = vmatprep.subr.mxu0 %v3821_v9  ;;  %3366 = vmatpush3.msra.mxu1 %v4366_v19 }
 0x56a   :  { %3357 = vmatpush3.msra.mxu0 %v4041_v21  ;;  %3367 = vmatprep.subr.mxu1 %v3821_v9  ;;  %v4385_v21 = vld [vmem:[#allocation10 + $0x10] sm:$0xff] }
 0x56b   :  { %3359 = vmatmul.mubr.msk.f32.vlgmr.msra.gmra.mxu0 %vm437_vm2, %v1825_v12  ;;  %3372 = vmatprep.subr.mxu0 %v3821_v9 }
 0x56c   :  { %3373 = vmatpush3.msra.mxu0 %v4373_v20  ;;  %3368 = vmatpush3.msra.mxu1 %v4379_v51 }
 0x56d   :  { %3374 = vmatprep.subr.mxu0 %v3821_v9  ;;  %3369 = vmatprep.mubr.msk.f32.mxu1 %vm3822_vm3, %v3821_v9 }
 0x56e   :  { %3375 = vmatpush3.msra.mxu0 %v4385_v21  ;;  %3380 = vmatprep.mubr.msk.f32.mxu0 %vm3822_vm3, %v3821_v9 }
 0x56f   :  { %3376 = vmatprep.subr.mxu0 %v3821_v9  ;;  %3383 = vmatprep.subr.mxu1 %v3821_v9 }
 0x570   :  { %3377 = vmatpush3.msra.mxu0 %v4392_v13 }
 0x571   :  { %3378 = vmatprep.subr.mxu0 %v3821_v9 }
 0x572   :  { %3379 = vmatpush3.msra.mxu0 %v4396_v14 }
 0x573   :  { %3394 = vmatprep.subr.mxu0 %v3821_v9 }
 0x623   :  { %v1894_v56 = vpop.f32.mrf.mxu0  ;;  %v1964_v58 = vpop.f32.mrf.mxu1 }
 0x624   :  { %v2039_v6 = vrot.slane %v1894_v56, 3  ;;  %v2040_v8 = vrot.slane %v1894_v56, 4  ;;  %v2058_v28 = vrot.slane %v1964_v58, 3  ;;  %v2059_v30 = vrot.slane %v1964_v58, 4 }
 0x625   :  { %v3338_v22 = vpop.f32.mrf.mxu0  ;;  %v3349_v16 = vpop.f32.mrf.mxu1 }
 0x626   :  { %v2043_v23 = vadd.f32 %v2039_v6, %v4075_v26  ;;  %v2044_v18 = vadd.f32 %v2040_v8, %v4077_v29  ;;  %v2062_v27 = vadd.f32 %v2058_v28, %v4084_v40  ;;  %v2063_v32 = vadd.f32 %v2059_v30, %v4086_v42 }
 0x628   :  { %v2974_v24 = vmul.f32 -1.442695, %v2043_v23  ;;  %v2975_v25 = vmul.f32 -1.442695, %v2044_v18  ;;  %v2976_v15 = vmul.f32 -1.442695, %v2062_v27 }
 0x629   :  { %v2977_v37 = vmul.f32 -1.442695, %v2063_v32  ;;  %v4428_v18 = vld [vmem:[#allocation11 + $0x18] sm:$0xff] }
 0x62a   :  { %3561 = vpow2.f32 %v2974_v24 }
 0x62b   :  { %3563 = vpow2.f32 %v2975_v25  ;;  %v2034_v31 = vpop.f32.mrf.mxu0 }
 0x62c   :  { %3565 = vpow2.f32 %v2976_v15  ;;  %v2035_v47 = vadd.f32 %v4093_v54, %v2034_v31  ;;  %v2091_v54 = vrot.slane %v4324_v5, 7 }
 0x62d   :  { %v3360_v36 = vpop.f32.mrf.mxu0  ;;  %3567 = vpow2.f32 %v2977_v37 }
 0x62e   :  { %v2077_v52 = vrot.slane %v2035_v47, 3  ;;  %v2078_v55 = vrot.slane %v2035_v47, 4 }
 0x637   :  { %v3562_v41 = vpop.eup %3561 }
 0x638   :  { %v3564_v43 = vpop.eup %3563  ;;  %v2051_v35 = vadd.f32 1.0, %v3562_v41 }
 0x639   :  { %v2052_v44 = vadd.f32 1.0, %v3564_v43  ;;  %v3566_v45 = vpop.eup %3565 }
 0x63a   :  { %3569 = vrcp.f32 %v2051_v35  ;;  %v3568_v46 = vpop.eup %3567  ;;  %v2070_v48 = vadd.f32 1.0, %v3566_v45 }
 0x63b   :  { %3571 = vrcp.f32 %v2052_v44  ;;  %v2071_v49 = vadd.f32 1.0, %v3568_v46 }
 0x63c   :  { %3573 = vrcp.f32 %v2070_v48  ;;  %v4473_v48 = vld [vmem:[%s4574_s11] ss:$0 sm:$0xff] }
 0x63d   :  { %3575 = vrcp.f32 %v2071_v49 }
 0x647   :  { %v3570_v53 = vpop.eup %3569 }
 0x648   :  { %v3572_v57 = vpop.eup %3571  ;;  %v2081_v59 = vmul.f32 %v3570_v53, %v2077_v52 }
 0x649   :  { %v2082_v33 = vmul.f32 %v3572_v57, %v2078_v55  ;;  %v3574_v39 = vpop.eup %3573 }
 0x64a   :  { %v2083_v34 = vadd.f32 %v2081_v59, %v4099_v63  ;;  %v3576_v60 = vpop.eup %3575  ;;  %v2087_v61 = vsub.f32 1.0, %v3574_v39  ;;  %v2095_v12 = vmul.f32 %v3574_v39, %v2091_v54 }
 0x64b   :  { %v2084_v38 = vadd.f32 %v2082_v33, %v4101_v2  ;;  %v2088_v3 = vsub.f32 1.0, %v3576_v60  ;;  %v2096_v58 = vmul.f32 %v3576_v60, %v2092_v50 }
 0x64c   :  { %3577 = vtanh.f32 %v2083_v34 }
 0x64d   :  { %3579 = vtanh.f32 %v2084_v38 }
 0x659   :  { %v3578_v62 = vpop.eup %3577 }
 0x65a   :  { %v3580_v10 = vpop.eup %3579  ;;  %v2089_v0 = vmul.f32 %v3578_v62, %v2087_v61 }
 0x65b   :  { %v2090_v56 = vmul.f32 %v3580_v10, %v2088_v3 }
 0x65c   :  { %v4409_v6 = vadd.f32 %v2095_v12, %v2089_v0 }
 0x65d   :  { %v4411_v8 = vadd.f32 %v2096_v58, %v2090_v56 }
 0x65e   :  { %v2101_v22 = vrot.slane %v4409_v6, 5  ;;  %v4417_v16 = vsel %vm189_vm0, %v4331_v11, %v4409_v6  ;;  %v4435_v11 = vld [vmem:[#allocation11 + $0x10] sm:$0xff]  ;;  %v2369_v3 = vrot.slane %v4409_v6, 7 }
 0x65f   :  { %v2102_v5 = vrot.slane %v4411_v8, 4  ;;  %v4423_v7 = vsel %vm189_vm0, %v4336_v1, %v4411_v8  ;;  %v4441_v1 = vld [vmem:[#allocation11 + $0x8] sm:$0xff]  ;;  %v2370_v0 = vrot.slane %v4411_v8, 7 }
 0x661   :  { %v2103_v23 = vsel %vm717_vm4, %v2102_v5, %v2101_v22 }
 0x662   :  { %3370 = vmatmul.mubr.msk.f32.vlgmr.msra.gmra.mxu1 %vm437_vm2, %v2103_v23  ;;  %3381 = vmatmul.mubr.msk.f32.vlgmr.msra.gmra.mxu0 %vm437_vm2, %v2103_v23 }
 0x663   :  { %3384 = vmatpush3.msra.mxu1 %v4428_v18  ;;  %3391 = vmatprep.mubr.msk.f32.mxu1 %vm3822_vm3, %v3821_v9 }
 0x664   :  { %3385 = vmatprep.subr.mxu1 %v3821_v9  ;;  %3395 = vmatpush3.msra.mxu0 %v4348_v4  ;;  %v4447_v4 = vld [vmem:[#allocation11] sm:$0xff] }
 0x665   :  { %3386 = vmatpush3.msra.mxu1 %v4435_v11  ;;  %3396 = vmatprep.subr.mxu0 %v3821_v9 }
 0x666   :  { %3387 = vmatprep.subr.mxu1 %v3821_v9  ;;  %3397 = vmatpush3.msra.mxu0 %v4357_v17 }
 0x667   :  { %3388 = vmatpush3.msra.mxu1 %v4441_v1  ;;  %3398 = vmatprep.subr.mxu0 %v3821_v9 }
 0x668   :  { %3389 = vmatprep.subr.mxu1 %v3821_v9  ;;  %3399 = vmatpush3.msra.mxu0 %v4366_v19 }
 0x669   :  { %3390 = vmatpush3.msra.mxu1 %v4447_v4  ;;  %3400 = vmatprep.subr.mxu0 %v3821_v9 }
 0x66a   :  { %3392 = vmatmul.mubr.msk.f32.vlgmr.msra.gmra.mxu1 %vm437_vm2, %v2103_v23  ;;  %3405 = vmatprep.subr.mxu1 %v3821_v9 }
 0x66b   :  { %3406 = vmatpush3.msra.mxu1 %v4373_v20  ;;  %3401 = vmatpush3.msra.mxu0 %v4379_v51 }
 0x66c   :  { %3407 = vmatprep.subr.mxu1 %v3821_v9  ;;  %3402 = vmatprep.mubr.msk.f32.mxu0 %vm3822_vm3, %v3821_v9 }
 0x66d   :  { %3408 = vmatpush3.msra.mxu1 %v4385_v21  ;;  %3413 = vmatprep.mubr.msk.f32.mxu1 %vm3822_vm3, %v3821_v9 }
 0x66e   :  { %3409 = vmatprep.subr.mxu1 %v3821_v9  ;;  %3416 = vmatprep.subr.mxu0 %v3821_v9 }
 0x66f   :  { %3410 = vmatpush3.msra.mxu1 %v4392_v13 }
 0x670   :  { %3411 = vmatprep.subr.mxu1 %v3821_v9 }
 0x671   :  { %3412 = vmatpush3.msra.mxu1 %v4396_v14 }
 0x722   :  { %v2172_v17 = vpop.f32.mrf.mxu1  ;;  %v2242_v19 = vpop.f32.mrf.mxu0 }
 0x723   :  { %v2317_v20 = vrot.slane %v2172_v17, 2  ;;  %v2318_v51 = vrot.slane %v2172_v17, 3  ;;  %v2336_v27 = vrot.slane %v2242_v19, 2  ;;  %v2337_v32 = vrot.slane %v2242_v19, 3 }
 0x724   :  { %v3371_v24 = vpop.f32.mrf.mxu1  ;;  %v3382_v25 = vpop.f32.mrf.mxu0 }
 0x725   :  { %v2321_v21 = vadd.f32 %v2317_v20, %v4075_v26  ;;  %v2322_v28 = vadd.f32 %v2318_v51, %v4077_v29  ;;  %v2340_v36 = vadd.f32 %v2336_v27, %v4084_v40  ;;  %v2341_v14 = vadd.f32 %v2337_v32, %v4086_v42  ;;  %v2684_v24 = vld [vmem:[#allocation13] sm:$0xff] }
 0x727   :  { %v2981_v30 = vmul.f32 -1.442695, %v2321_v21  ;;  %v2982_v31 = vmul.f32 -1.442695, %v2322_v28  ;;  %v2983_v37 = vmul.f32 -1.442695, %v2340_v36 }
 0x728   :  { %v2984_v41 = vmul.f32 -1.442695, %v2341_v14 }
 0x729   :  { %3581 = vpow2.f32 %v2981_v30 }
 0x72a   :  { %3583 = vpow2.f32 %v2982_v31  ;;  %v2312_v13 = vpop.f32.mrf.mxu1 }
 0x72b   :  { %3585 = vpow2.f32 %v2983_v37  ;;  %v2313_v49 = vadd.f32 %v4473_v48, %v2312_v13 }
 0x72c   :  { %v3393_v15 = vpop.f32.mrf.mxu1  ;;  %3587 = vpow2.f32 %v2984_v41 }
 0x72d   :  { %v2355_v55 = vrot.slane %v2313_v49, 2  ;;  %v2356_v59 = vrot.slane %v2313_v49, 3 }
 0x736   :  { %v3582_v43 = vpop.eup %3581 }
 0x737   :  { %v3584_v35 = vpop.eup %3583  ;;  %v2329_v44 = vadd.f32 1.0, %v3582_v43 }
 0x738   :  { %v2330_v45 = vadd.f32 1.0, %v3584_v35  ;;  %v3586_v46 = vpop.eup %3585 }
 0x739   :  { %3589 = vrcp.f32 %v2329_v44  ;;  %v3588_v47 = vpop.eup %3587  ;;  %v2348_v52 = vadd.f32 1.0, %v3586_v46 }
 0x73a   :  { %3591 = vrcp.f32 %v2330_v45  ;;  %v2349_v53 = vadd.f32 1.0, %v3588_v47 }
 0x73b   :  { %3593 = vrcp.f32 %v2348_v52 }
 0x73c   :  { %3595 = vrcp.f32 %v2349_v53 }
 0x746   :  { %v3590_v57 = vpop.eup %3589 }
 0x747   :  { %v3592_v33 = vpop.eup %3591  ;;  %v2359_v34 = vmul.f32 %v3590_v57, %v2355_v55 }
 0x748   :  { %v2360_v38 = vmul.f32 %v3592_v33, %v2356_v59  ;;  %v3594_v61 = vpop.eup %3593 }
 0x749   :  { %v2361_v39 = vadd.f32 %v2359_v34, %v4099_v63  ;;  %v3596_v54 = vpop.eup %3595  ;;  %v2365_v62 = vsub.f32 1.0, %v3594_v61  ;;  %v2373_v58 = vmul.f32 %v3594_v61, %v2369_v3 }
 0x74a   :  { %v2362_v60 = vadd.f32 %v2360_v38, %v4101_v2  ;;  %v2366_v10 = vsub.f32 1.0, %v3596_v54  ;;  %v2374_v5 = vmul.f32 %v3596_v54, %v2370_v0 }
 0x74b   :  { %3597 = vtanh.f32 %v2361_v39 }
 0x74c   :  { %3599 = vtanh.f32 %v2362_v60 }
 0x758   :  { %v3598_v50 = vpop.eup %3597 }
 0x759   :  { %v3600_v12 = vpop.eup %3599  ;;  %v2367_v56 = vmul.f32 %v3598_v50, %v2365_v62 }
 0x75a   :  { %v2368_v22 = vmul.f32 %v3600_v12, %v2366_v10 }
 0x75b   :  { %v4480_v23 = vadd.f32 %v2373_v58, %v2367_v56 }
 0x75c   :  { %v4482_v17 = vadd.f32 %v2374_v5, %v2368_v22  ;;  %v2781_v5 = vld [vmem:[%s4577_s14 + $0x18] sm:$0xff] }
 0x75d   :  { %v2379_v19 = vrot.slane %v4480_v23, 6  ;;  %v4487_v20 = vsel %vm2678_vm9, %v4417_v16, %v4480_v23  ;;  %v2687_v16 = vld [vmem:[#allocation13 + $0x18] sm:$0xff] }
 0x75e   :  { %v2380_v6 = vrot.slane %v4482_v17, 5  ;;  %v4492_v8 = vsel %vm2678_vm9, %v4423_v7, %v4482_v17  ;;  %v2686_v7 = vld [vmem:[#allocation13 + $0x10] sm:$0xff]  ;;  %3427 = vmatprep.subr.mxu1 %v2687_v16  ;;  %v2648_v62 = vrot.slane %v4482_v17, 7  ;;  %v2779_v17 = vld [vmem:[%s4577_s14 + $0x8] sm:$0xff] }
 0x760   :  { %v2381_v51 = vsel %vm717_vm4, %v2380_v6, %v2379_v19  ;;  %v2778_v19 = vld [vmem:[%s4577_s14] sm:$0xff] }
 0x761   :  { %3403 = vmatmul.mubr.msk.f32.vlgmr.msra.gmra.mxu0 %vm437_vm2, %v2381_v51  ;;  %3414 = vmatmul.mubr.msk.f32.vlgmr.msra.gmra.mxu1 %vm437_vm2, %v2381_v51 }
 0x762   :  { %3417 = vmatpush3.msra.mxu0 %v4428_v18  ;;  %3424 = vmatprep.mubr.msk.f32.mxu0 %vm3822_vm3, %v3821_v9  ;;  %v2685_v18 = vld [vmem:[#allocation13 + $0x8] sm:$0xff] }
 0x763   :  { %3418 = vmatprep.subr.mxu0 %v3821_v9  ;;  %3428 = vmatpush3.msra.mxu1 %v2687_v16 }
 0x764   :  { %3419 = vmatpush3.msra.mxu0 %v4435_v11  ;;  %3429 = vmatprep.subr.mxu1 %v2686_v7 }
 0x765   :  { %3420 = vmatprep.subr.mxu0 %v3821_v9  ;;  %3430 = vmatpush3.msra.mxu1 %v2686_v7 }
 0x766   :  { %3421 = vmatpush3.msra.mxu0 %v4441_v1  ;;  %3431 = vmatprep.subr.mxu1 %v2685_v18 }
 0x767   :  { %3422 = vmatprep.subr.mxu0 %v3821_v9  ;;  %3432 = vmatpush3.msra.mxu1 %v2685_v18 }
 0x768   :  { %3423 = vmatpush3.msra.mxu0 %v4447_v4  ;;  %3433 = vmatprep.subr.mxu1 %v2684_v24 }
 0x769   :  { %3425 = vmatmul.mubr.msk.f32.vlgmr.msra.gmra.mxu0 %vm437_vm2, %v2381_v51  ;;  %3434 = vmatpush3.msra.mxu1 %v2684_v24  ;;  %v2995_v24 = vld [vmem:[%s4578_s15] ss:$0 sm:$0xff]  ;;  %s3823_s15 = smov [#allocation14]  }
 0x76a   :  { %3438 = vmatprep.subr.mxu0 %v2781_v5 }
 0x76b   :  { %3439 = vmatpush3.msra.mxu0 %v2781_v5 }
 0x821   :  { %v2450_v11 = vpop.f32.mrf.mxu0  ;;  %v2520_v1 = vpop.f32.mrf.mxu1 }
 0x822   :  { %v2595_v25 = vrot.slane %v2450_v11, 1  ;;  %v2596_v9 = vrot.slane %v2450_v11, 2  ;;  %v2614_v32 = vrot.slane %v2520_v1, 1  ;;  %v2615_v13 = vrot.slane %v2520_v1, 2 }
 0x823   :  { %v3404_v21 = vpop.f32.mrf.mxu0  ;;  %v3415_v4 = vpop.f32.mrf.mxu1 }
 0x824   :  { %v2599_v28 = vadd.f32 %v2595_v25, %v4075_v26  ;;  %v2600_v30 = vadd.f32 %v2596_v9, %v4077_v29  ;;  %v2618_v14 = vadd.f32 %v2614_v32, %v4084_v40  ;;  %v2619_v15 = vadd.f32 %v2615_v13, %v4086_v42 }
 0x826   :  { %v2988_v31 = vmul.f32 -1.442695, %v2599_v28  ;;  %v2989_v27 = vmul.f32 -1.442695, %v2600_v30  ;;  %v2990_v41 = vmul.f32 -1.442695, %v2618_v14 }
 0x827   :  { %v2991_v43 = vmul.f32 -1.442695, %v2619_v15 }
 0x828   :  { %3601 = vpow2.f32 %v2988_v31 }
 0x829   :  { %3603 = vpow2.f32 %v2989_v27  ;;  %v2590_v36 = vpop.f32.mrf.mxu0 }
 0x82a   :  { %3605 = vpow2.f32 %v2990_v41  ;;  %v2591_v47 = vadd.f32 %v4473_v48, %v2590_v36  ;;  %v2647_v48 = vrot.slane %v4480_v23, 7  ;;  %v2780_v23 = vld [vmem:[%s4577_s14 + $0x10] sm:$0xff] }
 0x82b   :  { %v3426_v37 = vpop.f32.mrf.mxu0  ;;  %3607 = vpow2.f32 %v2991_v43  ;;  %3440 = vmatprep.subr.mxu0 %v2780_v23 }
 0x82c   :  { %v2633_v40 = vrot.slane %v2591_v47, 1  ;;  %v2634_v42 = vrot.slane %v2591_v47, 2  ;;  %3441 = vmatpush3.msra.mxu0 %v2780_v23 }
 0x82d   :  { %3442 = vmatprep.subr.mxu0 %v2779_v17 }
 0x82e   :  { %3443 = vmatpush3.msra.mxu0 %v2779_v17 }
 0x82f   :  { %3444 = vmatprep.subr.mxu0 %v2778_v19 }
 0x830   :  { %3445 = vmatpush3.msra.mxu0 %v2778_v19 }
 0x835   :  { %v3602_v35 = vpop.eup %3601 }
 0x836   :  { %v3604_v26 = vpop.eup %3603  ;;  %v2607_v44 = vadd.f32 1.0, %v3602_v35 }
 0x837   :  { %v2608_v29 = vadd.f32 1.0, %v3604_v26  ;;  %v3606_v45 = vpop.eup %3605 }
 0x838   :  { %3609 = vrcp.f32 %v2607_v44  ;;  %v3608_v46 = vpop.eup %3607  ;;  %v2626_v49 = vadd.f32 1.0, %v3606_v45 }
 0x839   :  { %3611 = vrcp.f32 %v2608_v29  ;;  %v2627_v52 = vadd.f32 1.0, %v3608_v46 }
 0x83a   :  { %3613 = vrcp.f32 %v2626_v49 }
 0x83b   :  { %3615 = vrcp.f32 %v2627_v52 }
 0x845   :  { %v3610_v53 = vpop.eup %3609 }
 0x846   :  { %v3612_v55 = vpop.eup %3611  ;;  %v2637_v57 = vmul.f32 %v3610_v53, %v2633_v40 }
 0x847   :  { %v2638_v59 = vmul.f32 %v3612_v55, %v2634_v42  ;;  %v3614_v38 = vpop.eup %3613 }
 0x848   :  { %v2639_v33 = vadd.f32 %v2637_v57, %v4099_v63  ;;  %v3616_v39 = vpop.eup %3615  ;;  %v2643_v60 = vsub.f32 1.0, %v3614_v38  ;;  %v2651_v10 = vmul.f32 %v3614_v38, %v2647_v48 }
 0x849   :  { %v2640_v34 = vadd.f32 %v2638_v59, %v4101_v2  ;;  %v2644_v54 = vsub.f32 1.0, %v3616_v39  ;;  %v2652_v12 = vmul.f32 %v3616_v39, %v2648_v62 }
 0x84a   :  { %3617 = vtanh.f32 %v2639_v33 }
 0x84b   :  { %3619 = vtanh.f32 %v2640_v34 }
 0x857   :  { %v3618_v61 = vpop.eup %3617 }
 0x858   :  { %v3620_v3 = vpop.eup %3619  ;;  %v2645_v50 = vmul.f32 %v3618_v61, %v2643_v60 }
 0x859   :  { %v2646_v0 = vmul.f32 %v3620_v3, %v2644_v54 }
 0x85a   :  { %v2653_v63 = vadd.f32 %v2651_v10, %v2645_v50 }
 0x85b   :  { %v2654_v2 = vadd.f32 %v2652_v12, %v2646_v0 }
 0x85c   :  { %v2682_v56 = vsel %vm2681_vm10, %v4487_v20, %v2653_v63  ;;  %2661 = vst.msk [vmem:[#allocation14 - $0x7] sm:$0x80] %vm2660_vm11, %v2653_v63  ;;  %v2992_v20 = vld [vmem:[%s4576_s13] ss:$0 sm:$0xff] }
 0x85d   :  { %3435 = vmatprep.mubr.msk.f32.mxu1 %vm437_vm2, %v2682_v56  ;;  %v2683_v58 = vsel %vm2681_vm10, %v4492_v8, %v2654_v2  ;;  %v2657_v22 = vrot.slane %v2654_v2, 7 }
 0x85e   :  { %3436 = vmatmul.mubr.msk.f32.vlgmr.msra.gmra.mxu1 %vm437_vm2, %v2683_v58 }
 0x85f   :  { %2663 = vst.msk [vmem:[#allocation14 + $0x1] sm:$0x1] %vm2662_vm12, %v2657_v22 }
 0x91e   :  { %v3437_v6 = vpop.f32.mrf.mxu1 }
 0x91f   :  { %v2773_v8 = vadd.f32 %v3437_v6, %v2992_v20 }
 0x920   :  { %v2767_v51 = vpop.f32.mrf.mxu1 }
 0x921   :  { %v2768_v16 = vadd.f32 %v2992_v20, %v2767_v51  ;;  %v2777_v18 = vmax.f32 %v2773_v8, 0.0 }
 0x923   :  { %v2776_v7 = vmax.f32 %v2768_v16, 0.0 }
 0x925   :  { %3446 = vmatprep.mubr.msk.f32.mxu0 %vm437_vm2, %v2776_v7 }
 0x926   :  { %3447 = vmatmul.mubr.msk.f32.vlgmr.msra.gmra.mxu0 %vm437_vm2, %v2777_v18 }
 0x9e6   :  { %v3448_v11 = vpop.f32.mrf.mxu0 }
 0x9e7   :  { %v2867_v1 = vadd.f32 %v3448_v11, %v2995_v24 }
 0x9e8   :  { %v2861_v25 = vpop.f32.mrf.mxu0 }
 0x9e9   :  { %2894 = vst.msk [vmem:[%s4580_s17 + $0x8] sm:$0xff] %vm2870_vm13, %v2867_v1  ;;  %v2862_v9 = vadd.f32 %v2995_v24, %v2861_v25  ;;  %v2874_v4 = vsel %vm2870_vm13, %v2867_v1, -inf }
 0x9eb   :  { %2893 = vst.msk [vmem:[%s4580_s17] sm:$0xff] %vm2870_vm13, %v2862_v9  ;;  %v2871_v21 = vsel %vm2870_vm13, %v2862_v9, -inf  ;;  %s2907_s17 = sshll.u32 %s3823_s15, 4  ;;  %s2908_s17 = int_to_ptr.vmem [resolvable:$true] %s2907_s17 }
 0x9ec   :  { %2872 = vmax.xlane.f32.xlu0 %v2871_v21  ;;  %s3782_s4 = scalar_lea.vmem %s2908_s17, 32  ;;  %p3787_p8 = scmp.lt.s32.totalorder %s2908_s17, %s2908_s17 }
 0x9ed   :  { %p3783_p7 = scmp.ne.s32.totalorder %s2908_s17, %s3782_s4  ;;  %p3788_p9 = scmp.lt.s32.totalorder %s3782_s4, %s3782_s4 }
 0x9ef   :  { %p3789_p10 = por %p3788_p9, %p3787_p8 }
 0x9f0   :  { %2875 = vmax.xlane.f32.xlu0 %v2874_v4 }
 0x9f1   :  { %p3790_p11 = pnand %p3789_p10, %p3783_p7 }
 0xa75   :  { %v2873_v28 = vpop.xlane.xlu0 %2872 }
 0xa76   :  { %v2877_v30 = vsub.f32 %v2862_v9, %v2873_v28 }
 0xa78   :  { %v2879_v31 = vmul.f32 1.442695, %v2877_v30 }
 0xa79   :  { %v2876_v27 = vpop.xlane.xlu0 %2875 }
 0xa7a   :  { %3621 = vpow2.f32 %v2879_v31  ;;  %v2878_v32 = vsub.f32 %v2867_v1, %v2876_v27 }
 0xa7c   :  { %v2881_v13 = vmul.f32 1.442695, %v2878_v32 }
 0xa7e   :  { %3623 = vpow2.f32 %v2881_v13 }
 0xa87   :  { %v3622_v36 = vpop.eup %3621 }
 0xa88   :  { %v2883_v14 = vsel %vm2870_vm13, %v3622_v36, 0.0 }
 0xa89   :  { %2884 = vadd.xlane.f32.xlu1 %v2883_v14 }
 0xa8b   :  { %v3624_v15 = vpop.eup %3623 }
 0xa8c   :  { %v2886_v37 = vsel %vm2870_vm13, %v3624_v15, 0.0 }
 0xa8d   :  { %2887 = vadd.xlane.f32.xlu1 %v2886_v37 }
 0xa8e   :  { %3793 = shalt.err (!%p3790_p11)
}
 0xa8f   :  { %2910 = dma.vmem_to_hbm [thread:$0]  %s2908_s17, 32, %s4581_s18, [#allocation4]  }
 0xb12   :  { %v2885_v41 = vpop.xlane.xlu1 %2884 }
 0xb13   :  { %3625 = vrcp.f32 %v2885_v41 }
 0xb16   :  { %v2888_v43 = vpop.xlane.xlu1 %2887 }
 0xb17   :  { %3627 = vrcp.f32 %v2888_v43 }
 0xb20   :  { %v3626_v35 = vpop.eup %3625 }
 0xb21   :  { %v2891_v26 = vmul.f32 %v3626_v35, %v3622_v36 }
 0xb23   :  { %2895 = vst.msk [vmem:[%s4579_s16] sm:$0xff] %vm2870_vm13, %v2891_v26 }
 0xb24   :  { %v3628_v44 = vpop.eup %3627 }
 0xb25   :  { %v2892_v29 = vmul.f32 %v3628_v44, %v3624_v15 }
 0xb27   :  { %2896 = vst.msk [vmem:[%s4579_s16 + $0x8] sm:$0xff] %vm2870_vm13, %v2892_v29 }
 0xb28   :  { %3810 = dma.done.wait [#allocation4], 32  }
 0xb29   :  { %3811 = vsyncadd [#allocation4], 4294967264 }
 0xb2a   :  { %2918 = vsyncpa [#allocation3], 1 }
 0xb2b   :  { %2919 = vsyncpa [#allocation6], 1 }
 0xb2c   :  { %2920 = vsyncpa [#allocation9], 1 }
 0xb2d   :  { %2921 = vsyncpa [#allocation12], 1 }
 0xb2e   :  { %2922 = vsyncpa [#allocation4], 1 }

</bundles_post_ra>
